<compile_context>
chip_gen: v7x
topology: tpu7x:2x2x1
jax: 0.10.0
libtpu: 0.0.40
codegen_flags: <defaults>
</compile_context>

<pallas_src>
import functools
import math

import jax
import jax.numpy as jnp
from jax.experimental import pallas as pl
from jax.experimental.pallas import tpu as pltpu


def _layernorm(x, gamma, beta, eps=1e-5):
    # x: (T, D) f32, gamma/beta: (1, D)
    mean = jnp.mean(x, axis=-1, keepdims=True)
    var = jnp.mean((x - mean) ** 2, axis=-1, keepdims=True)
    inv = jax.lax.rsqrt(var + eps)
    return (x - mean) * inv * gamma + beta


def encoder_layer_kernel(
    xt_ref, xf_ref,                                   # query-tile x / full-seq x
    wq_ref, bq_ref, wkv_ref, bkv_ref, wo_ref, bo_ref,
    ln1_g_ref, ln1_b_ref,
    w1_ref, b1_ref, w2_ref, b2_ref,
    ln2_g_ref, ln2_b_ref,
    out_ref,
    k_scr, v_scr,                                     # per-batch K/V caches (H, L, hd) bf16
    *, head_num, head_dim,
):
    H, hd = head_num, head_dim
    D = H * hd
    qi = pl.program_id(1)

    # ---- once per batch element: fused K/V projection, cached per-head ----------
    @pl.when(qi == 0)
    def _():
        xf = xf_ref[0].astype(jnp.bfloat16)                         # (L, D)
        kv = jnp.dot(xf, wkv_ref[...],
                     preferred_element_type=jnp.float32) + bkv_ref[...]   # (L, 2D) f32
        for h in range(H):
            k_scr[h] = kv[:, h * hd:(h + 1) * hd].astype(jnp.bfloat16)
            v_scr[h] = kv[:, D + h * hd:D + (h + 1) * hd].astype(jnp.bfloat16)

    # ---- per query tile ----------------------------------------------------------
    x_t = xt_ref[0].astype(jnp.float32)                             # (tq, D) residual
    x_bf = x_t.astype(jnp.bfloat16)

    # Q projection; hoist 1/temperature onto Q once (temperature = sqrt(H*hd)).
    inv_temp = 1.0 / math.sqrt(float(D))
    q = jnp.dot(x_bf, wq_ref[...],
                preferred_element_type=jnp.float32) + bq_ref[...]   # (tq, D) f32
    q = q * inv_temp
    qh = jnp.concatenate(
        [q[None, :, h * hd:(h + 1) * hd] for h in range(H)], axis=0
    ).astype(jnp.bfloat16)                                          # (H, tq, hd)

    kh = k_scr[...]                                                 # (H, L, hd) bf16
    vh = v_scr[...]                                                 # (H, L, hd) bf16

    # Batched-head attention (no k.T materialization, no per-head loop).
    s = jnp.einsum('hqd,hkd->hqk', qh, kh,
                   preferred_element_type=jnp.float32)              # (H, tq, L) f32
    s = s - jnp.max(s, axis=-1, keepdims=True)
    p = jnp.exp(s)
    denom = jnp.sum(p, axis=-1, keepdims=True)
    p = p * pl.reciprocal(denom, approx=True)                       # EUP, VALU-free
    ctx = jnp.einsum('hqk,hkd->hqd', p.astype(jnp.bfloat16), vh,
                     preferred_element_type=jnp.float32)            # (H, tq, hd) f32

    attn = jnp.concatenate([ctx[h] for h in range(H)], axis=-1)     # (tq, D) f32
    attn = jnp.dot(attn.astype(jnp.bfloat16), wo_ref[...],
                   preferred_element_type=jnp.float32) + bo_ref[...]

    # ---- residual + LayerNorm 1 ---------------------------------------------------
    out1 = _layernorm(attn + x_t, ln1_g_ref[...], ln1_b_ref[...])

    # ---- Feedforward: Linear -> ReLU -> Linear -> ReLU (matches spec) -------------
    h1 = jnp.dot(out1.astype(jnp.bfloat16), w1_ref[...],
                 preferred_element_type=jnp.float32) + b1_ref[...]
    h1 = jnp.maximum(h1, 0.0)
    h2 = jnp.dot(h1.astype(jnp.bfloat16), w2_ref[...],
                 preferred_element_type=jnp.float32) + b2_ref[...]
    h2 = jnp.maximum(h2, 0.0)

    # ---- residual + LayerNorm 2 ---------------------------------------------------
    out2 = _layernorm(h2 + out1, ln2_g_ref[...], ln2_b_ref[...])
    out_ref[0] = out2.astype(out_ref.dtype)                          # lane-dense (full D)


def _pick_q_tile(L):
    for t in (128, 256, 512):
        if L % t == 0:
            return t
    return L  # small / irregular sequences: one tile = whole sequence


def transformer_encoder_layer(x, params, *, head_num, q_tile=None):
    """x: (B, L, D) float32. params: dict of f32 weights (see init_params)."""
    B, L, D = x.shape
    assert D % head_num == 0
    head_dim = D // head_num
    F = params["w1"].shape[1]
    if q_tile is None:
        q_tile = _pick_q_tile(L)
    assert L % q_tile == 0
    n_q_tiles = L // q_tile

    bf16 = jnp.bfloat16
    # bf16 weights (halved HBM/VMEM traffic; f32 accumulation preserved in-kernel).
    wq = params["wq"].astype(bf16)
    wkv = jnp.concatenate([params["wk"], params["wv"]], axis=1).astype(bf16)   # (D, 2D)
    bkv = jnp.concatenate([params["bk"], params["bv"]], axis=1)                # (1, 2D) f32
    wo = params["wo"].astype(bf16)
    w1 = params["w1"].astype(bf16)
    w2 = params["w2"].astype(bf16)

    def _const_spec(shape):
        # Weights/biases never change across grid steps -> single-buffer them.
        idx = lambda b, t: (0,) * len(shape)
        try:
            return pl.BlockSpec(shape, idx, pipeline_mode=pl.Buffered(1))
        except (AttributeError, TypeError):   # older pallas without pipeline_mode
            return pl.BlockSpec(shape, idx)

    in_specs = [
        pl.BlockSpec((1, q_tile, D), lambda b, t: (b, t, 0)),   # x (query tile)
        pl.BlockSpec((1, L, D), lambda b, t: (b, 0, 0)),        # x (full seq, for K/V)
        _const_spec((D, D)), _const_spec((1, D)),               # wq, bq
        _const_spec((D, 2 * D)), _const_spec((1, 2 * D)),       # wkv, bkv
        _const_spec((D, D)), _const_spec((1, D)),               # wo, bo
        _const_spec((1, D)), _const_spec((1, D)),               # ln1 gamma, beta
        _const_spec((D, F)), _const_spec((1, F)),               # w1, b1
        _const_spec((F, D)), _const_spec((1, D)),               # w2, b2
        _const_spec((1, D)), _const_spec((1, D)),               # ln2 gamma, beta
    ]

    kernel = functools.partial(
        encoder_layer_kernel, head_num=head_num, head_dim=head_dim)

    return pl.pallas_call(
        kernel,
        out_shape=jax.ShapeDtypeStruct((B, L, D), x.dtype),
        grid_spec=pltpu.PrefetchScalarGridSpec(
            num_scalar_prefetch=0,
            grid=(B, n_q_tiles),
            in_specs=in_specs,
            out_specs=pl.BlockSpec((1, q_tile, D), lambda b, t: (b, t, 0)),
            scratch_shapes=[
                pltpu.VMEM((head_num, L, head_dim), jnp.bfloat16),   # K cache
                pltpu.VMEM((head_num, L, head_dim), jnp.bfloat16),   # V cache
            ],
        ),
        compiler_params=pltpu.CompilerParams(
            # q-tile axis must stay sequential per batch element (it reuses the
            # per-batch K/V scratch written at tile 0); batch axis shards across cores.
            dimension_semantics=("parallel", "arbitrary"),
            vmem_limit_bytes=64 * 1024 * 1024,
        ),
    )(
        x, x,
        wq, params["bq"], wkv, bkv, wo, params["bo"],
        params["ln1_g"], params["ln1_b"],
        w1, params["b1"], w2, params["b2"],
        params["ln2_g"], params["ln2_b"],
    )


def init_params(key, input_size, filter_size):
    D, F = input_size, filter_size
    ks = jax.random.split(key, 12)
    s = 0.05
    return {
        "wq": s * jax.random.normal(ks[0], (D, D), jnp.float32),
        "bq": s * jax.random.normal(ks[1], (1, D), jnp.float32),
        "wk": s * jax.random.normal(ks[2], (D, D), jnp.float32),
        "bk": s * jax.random.normal(ks[3], (1, D), jnp.float32),
        "wv": s * jax.random.normal(ks[4], (D, D), jnp.float32),
        "bv": s * jax.random.normal(ks[5], (1, D), jnp.float32),
        "wo": s * jax.random.normal(ks[6], (D, D), jnp.float32),
        "bo": s * jax.random.normal(ks[7], (1, D), jnp.float32),
        "ln1_g": jnp.ones((1, D), jnp.float32),
        "ln1_b": jnp.zeros((1, D), jnp.float32),
        "w1": s * jax.random.normal(ks[8], (D, F), jnp.float32),
        "b1": s * jax.random.normal(ks[9], (1, F), jnp.float32),
        "w2": s * jax.random.normal(ks[10], (F, D), jnp.float32),
        "b2": s * jax.random.normal(ks[11], (1, D), jnp.float32),
        "ln2_g": jnp.ones((1, D), jnp.float32),
        "ln2_b": jnp.zeros((1, D), jnp.float32),
    }


def reference_forward(x, params, head_num):
    """Pure-JAX f32 reference mirroring the PyTorch module (eval mode)."""
    B, L, D = x.shape
    hd = D // head_num
    lin = lambda t, w, b: t @ w + b
    split = lambda t: t.reshape(B, L, head_num, hd).transpose(0, 2, 1, 3)
    qh = split(lin(x, params["wq"], params["bq"]))
    kh = split(lin(x, params["wk"], params["bk"]))
    vh = split(lin(x, params["wv"], params["bv"]))
    temp = float(head_num * hd) ** 0.5
    s = jnp.einsum('bhqd,bhkd->bhqk', qh, kh) / temp
    p = jax.nn.softmax(s, axis=-1)
    ctx = jnp.einsum('bhqk,bhkd->bhqd', p, vh).transpose(0, 2, 1, 3).reshape(B, L, D)
    att = lin(ctx, params["wo"], params["bo"])

    def ln(t, g, b, eps=1e-5):
        m = t.mean(-1, keepdims=True)
        v = ((t - m) ** 2).mean(-1, keepdims=True)
        return (t - m) / jnp.sqrt(v + eps) * g + b

    out1 = ln(att + x, params["ln1_g"], params["ln1_b"])
    h1 = jax.nn.relu(lin(out1, params["w1"], params["b1"]))
    h2 = jax.nn.relu(lin(h1, params["w2"], params["b2"]))
    return ln(h2 + out1, params["ln2_g"], params["ln2_b"])


if __name__ == "__main__":
    # Small shapes: batch=2, seq=8, hidden=32, filter=64, heads=4.
    B, L, D, F, H = 2, 8, 32, 64, 4

    key = jax.random.PRNGKey(0)
    kx, kp = jax.random.split(key)
    x = jax.random.normal(kx, (B, L, D), jnp.float32)
    params = init_params(kp, input_size=D, filter_size=F)

    out = jax.block_until_ready(transformer_encoder_layer(x, params, head_num=H))

    assert out.shape == (B, L, D), out.shape
    assert bool(jnp.all(jnp.isfinite(out))), "non-finite output"

    ref = reference_forward(x, params, H)
    max_err = float(jnp.max(jnp.abs(out - ref)))
    assert max_err < 5e-2, f"mismatch vs f32 reference: max abs err {max_err}"
    print("KERNEL_OK")
</pallas_src>

<mosaic_0001>
module attributes {stable_mosaic.version = 11 : i64} {
  func.func @encoder_layer_kernel(%arg0: i32, %arg1: i32, %arg2: memref<1x8x32xf32, #tpu.memory_space<vmem>>, %arg3: memref<1x8x32xf32, #tpu.memory_space<vmem>>, %arg4: memref<32x32xbf16, #tpu.memory_space<vmem>>, %arg5: memref<1x32xf32, #tpu.memory_space<vmem>>, %arg6: memref<32x64xbf16, #tpu.memory_space<vmem>>, %arg7: memref<1x64xf32, #tpu.memory_space<vmem>>, %arg8: memref<32x32xbf16, #tpu.memory_space<vmem>>, %arg9: memref<1x32xf32, #tpu.memory_space<vmem>>, %arg10: memref<1x32xf32, #tpu.memory_space<vmem>>, %arg11: memref<1x32xf32, #tpu.memory_space<vmem>>, %arg12: memref<32x64xbf16, #tpu.memory_space<vmem>>, %arg13: memref<1x64xf32, #tpu.memory_space<vmem>>, %arg14: memref<64x32xbf16, #tpu.memory_space<vmem>>, %arg15: memref<1x32xf32, #tpu.memory_space<vmem>>, %arg16: memref<1x32xf32, #tpu.memory_space<vmem>>, %arg17: memref<1x32xf32, #tpu.memory_space<vmem>>, %arg18: memref<1x8x32xf32, #tpu.memory_space<vmem>>, %arg19: memref<4x8x8xbf16, #tpu.memory_space<vmem>>, %arg20: memref<4x8x8xbf16, #tpu.memory_space<vmem>>) attributes {dimension_semantics = [#tpu.dimension_semantics<parallel>, #tpu.dimension_semantics<arbitrary>], iteration_bounds = array<i64: 2, 1>, scalar_prefetch = 0 : i64, scratch_operands = 2 : i64, tpu.core_type = #tpu.core_type<tc>, window_params = [{transform_indices = @transform_0, window_bounds = array<i64: 1, 8, 32>}, {transform_indices = @transform_1, window_bounds = array<i64: 1, 8, 32>}, {pipeline_mode = #tpu.pipeline_mode<synchronous>, transform_indices = @transform_2, window_bounds = array<i64: 32, 32>}, {pipeline_mode = #tpu.pipeline_mode<synchronous>, transform_indices = @transform_3, window_bounds = array<i64: 1, 32>}, {pipeline_mode = #tpu.pipeline_mode<synchronous>, transform_indices = @transform_4, window_bounds = array<i64: 32, 64>}, {pipeline_mode = #tpu.pipeline_mode<synchronous>, transform_indices = @transform_5, window_bounds = array<i64: 1, 64>}, {pipeline_mode = #tpu.pipeline_mode<synchronous>, transform_indices = @transform_6, window_bounds = array<i64: 32, 32>}, {pipeline_mode = #tpu.pipeline_mode<synchronous>, transform_indices = @transform_7, window_bounds = array<i64: 1, 32>}, {pipeline_mode = #tpu.pipeline_mode<synchronous>, transform_indices = @transform_8, window_bounds = array<i64: 1, 32>}, {pipeline_mode = #tpu.pipeline_mode<synchronous>, transform_indices = @transform_9, window_bounds = array<i64: 1, 32>}, {pipeline_mode = #tpu.pipeline_mode<synchronous>, transform_indices = @transform_10, window_bounds = array<i64: 32, 64>}, {pipeline_mode = #tpu.pipeline_mode<synchronous>, transform_indices = @transform_11, window_bounds = array<i64: 1, 64>}, {pipeline_mode = #tpu.pipeline_mode<synchronous>, transform_indices = @transform_12, window_bounds = array<i64: 64, 32>}, {pipeline_mode = #tpu.pipeline_mode<synchronous>, transform_indices = @transform_13, window_bounds = array<i64: 1, 32>}, {pipeline_mode = #tpu.pipeline_mode<synchronous>, transform_indices = @transform_14, window_bounds = array<i64: 1, 32>}, {pipeline_mode = #tpu.pipeline_mode<synchronous>, transform_indices = @transform_15, window_bounds = array<i64: 1, 32>}, {transform_indices = @transform_16, window_bounds = array<i64: 1, 8, 32>}]} {
    %c0_i32 = arith.constant 0 : i32
    %0 = arith.cmpi eq, %arg1, %c0_i32 : i32
    %1 = arith.extui %0 : i1 to i32
    %c0_i32_0 = arith.constant 0 : i32
    %2 = arith.cmpi ne, %1, %c0_i32_0 : i32
    scf.if %2 {
      %c0_56 = arith.constant 0 : index
      %c0_57 = arith.constant 0 : index
      %c0_58 = arith.constant 0 : index
      %122 = vector.load %arg3[%c0_56, %c0_57, %c0_58] : memref<1x8x32xf32, #tpu.memory_space<vmem>>, vector<1x8x32xf32>
      %123 = vector.shape_cast %122 : vector<1x8x32xf32> to vector<8x32xf32>
      %124 = arith.truncf %123 : vector<8x32xf32> to vector<8x32xbf16>
      %c0_59 = arith.constant 0 : index
      %c0_60 = arith.constant 0 : index
      %125 = vector.load %arg6[%c0_59, %c0_60] : memref<32x64xbf16, #tpu.memory_space<vmem>>, vector<32x64xbf16>
      %cst_61 = arith.constant dense<0.000000e+00> : vector<8x64xf32>
      %126 = tpu.matmul %124, %125, %cst_61 {dimension_numbers = #tpu.dot_dimension_numbers<[1], [0], [0], [1], [0, 0, 1, 1], [], []>} : vector<8x32xbf16>, vector<32x64xbf16>, vector<8x64xf32> -> vector<8x64xf32>
      %c0_62 = arith.constant 0 : index
      %c0_63 = arith.constant 0 : index
      %127 = vector.load %arg7[%c0_62, %c0_63] : memref<1x64xf32, #tpu.memory_space<vmem>>, vector<1x64xf32>
      %128 = vector.broadcast %127 : vector<1x64xf32> to vector<8x64xf32>
      %129 = arith.addf %126, %128 : vector<8x64xf32>
      %130 = vector.extract_strided_slice %129 {offsets = [0, 0], sizes = [8, 8], strides = [1, 1]} : vector<8x64xf32> to vector<8x8xf32>
      %131 = arith.truncf %130 : vector<8x8xf32> to vector<8x8xbf16>
      %c0_64 = arith.constant 0 : index
      %c0_65 = arith.constant 0 : index
      %c0_66 = arith.constant 0 : index
      %132 = vector.load %arg19[%c0_64, %c0_65, %c0_66] : memref<4x8x8xbf16, #tpu.memory_space<vmem>>, vector<1x8x8xbf16>
      %133 = vector.shape_cast %132 : vector<1x8x8xbf16> to vector<8x8xbf16>
      %134 = vector.shape_cast %131 : vector<8x8xbf16> to vector<1x8x8xbf16>
      tpu.vector_store %arg19[%c0_64, %c0_65, %c0_66], %134 {strides = array<i32>} : memref<4x8x8xbf16, #tpu.memory_space<vmem>>, vector<1x8x8xbf16>,
      %135 = vector.extract_strided_slice %129 {offsets = [0, 32], sizes = [8, 8], strides = [1, 1]} : vector<8x64xf32> to vector<8x8xf32>
      %136 = arith.truncf %135 : vector<8x8xf32> to vector<8x8xbf16>
      %c0_67 = arith.constant 0 : index
      %c0_68 = arith.constant 0 : index
      %c0_69 = arith.constant 0 : index
      %137 = vector.load %arg20[%c0_67, %c0_68, %c0_69] : memref<4x8x8xbf16, #tpu.memory_space<vmem>>, vector<1x8x8xbf16>
      %138 = vector.shape_cast %137 : vector<1x8x8xbf16> to vector<8x8xbf16>
      %139 = vector.shape_cast %136 : vector<8x8xbf16> to vector<1x8x8xbf16>
      tpu.vector_store %arg20[%c0_67, %c0_68, %c0_69], %139 {strides = array<i32>} : memref<4x8x8xbf16, #tpu.memory_space<vmem>>, vector<1x8x8xbf16>,
      %140 = vector.extract_strided_slice %129 {offsets = [0, 8], sizes = [8, 8], strides = [1, 1]} : vector<8x64xf32> to vector<8x8xf32>
      %141 = arith.truncf %140 : vector<8x8xf32> to vector<8x8xbf16>
      %c1 = arith.constant 1 : index
      %c0_70 = arith.constant 0 : index
      %c0_71 = arith.constant 0 : index
      %142 = vector.load %arg19[%c1, %c0_70, %c0_71] : memref<4x8x8xbf16, #tpu.memory_space<vmem>>, vector<1x8x8xbf16>
      %143 = vector.shape_cast %142 : vector<1x8x8xbf16> to vector<8x8xbf16>
      %144 = vector.shape_cast %141 : vector<8x8xbf16> to vector<1x8x8xbf16>
      tpu.vector_store %arg19[%c1, %c0_70, %c0_71], %144 {strides = array<i32>} : memref<4x8x8xbf16, #tpu.memory_space<vmem>>, vector<1x8x8xbf16>,
      %145 = vector.extract_strided_slice %129 {offsets = [0, 40], sizes = [8, 8], strides = [1, 1]} : vector<8x64xf32> to vector<8x8xf32>
      %146 = arith.truncf %145 : vector<8x8xf32> to vector<8x8xbf16>
      %c1_72 = arith.constant 1 : index
      %c0_73 = arith.constant 0 : index
      %c0_74 = arith.constant 0 : index
      %147 = vector.load %arg20[%c1_72, %c0_73, %c0_74] : memref<4x8x8xbf16, #tpu.memory_space<vmem>>, vector<1x8x8xbf16>
      %148 = vector.shape_cast %147 : vector<1x8x8xbf16> to vector<8x8xbf16>
      %149 = vector.shape_cast %146 : vector<8x8xbf16> to vector<1x8x8xbf16>
      tpu.vector_store %arg20[%c1_72, %c0_73, %c0_74], %149 {strides = array<i32>} : memref<4x8x8xbf16, #tpu.memory_space<vmem>>, vector<1x8x8xbf16>,
      %150 = vector.extract_strided_slice %129 {offsets = [0, 16], sizes = [8, 8], strides = [1, 1]} : vector<8x64xf32> to vector<8x8xf32>
      %151 = arith.truncf %150 : vector<8x8xf32> to vector<8x8xbf16>
      %c2 = arith.constant 2 : index
      %c0_75 = arith.constant 0 : index
      %c0_76 = arith.constant 0 : index
      %152 = vector.load %arg19[%c2, %c0_75, %c0_76] : memref<4x8x8xbf16, #tpu.memory_space<vmem>>, vector<1x8x8xbf16>
      %153 = vector.shape_cast %152 : vector<1x8x8xbf16> to vector<8x8xbf16>
      %154 = vector.shape_cast %151 : vector<8x8xbf16> to vector<1x8x8xbf16>
      tpu.vector_store %arg19[%c2, %c0_75, %c0_76], %154 {strides = array<i32>} : memref<4x8x8xbf16, #tpu.memory_space<vmem>>, vector<1x8x8xbf16>,
      %155 = vector.extract_strided_slice %129 {offsets = [0, 48], sizes = [8, 8], strides = [1, 1]} : vector<8x64xf32> to vector<8x8xf32>
      %156 = arith.truncf %155 : vector<8x8xf32> to vector<8x8xbf16>
      %c2_77 = arith.constant 2 : index
      %c0_78 = arith.constant 0 : index
      %c0_79 = arith.constant 0 : index
      %157 = vector.load %arg20[%c2_77, %c0_78, %c0_79] : memref<4x8x8xbf16, #tpu.memory_space<vmem>>, vector<1x8x8xbf16>
      %158 = vector.shape_cast %157 : vector<1x8x8xbf16> to vector<8x8xbf16>
      %159 = vector.shape_cast %156 : vector<8x8xbf16> to vector<1x8x8xbf16>
      tpu.vector_store %arg20[%c2_77, %c0_78, %c0_79], %159 {strides = array<i32>} : memref<4x8x8xbf16, #tpu.memory_space<vmem>>, vector<1x8x8xbf16>,
      %160 = vector.extract_strided_slice %129 {offsets = [0, 24], sizes = [8, 8], strides = [1, 1]} : vector<8x64xf32> to vector<8x8xf32>
      %161 = arith.truncf %160 : vector<8x8xf32> to vector<8x8xbf16>
      %c3 = arith.constant 3 : index
      %c0_80 = arith.constant 0 : index
      %c0_81 = arith.constant 0 : index
      %162 = vector.load %arg19[%c3, %c0_80, %c0_81] : memref<4x8x8xbf16, #tpu.memory_space<vmem>>, vector<1x8x8xbf16>
      %163 = vector.shape_cast %162 : vector<1x8x8xbf16> to vector<8x8xbf16>
      %164 = vector.shape_cast %161 : vector<8x8xbf16> to vector<1x8x8xbf16>
      tpu.vector_store %arg19[%c3, %c0_80, %c0_81], %164 {strides = array<i32>} : memref<4x8x8xbf16, #tpu.memory_space<vmem>>, vector<1x8x8xbf16>,
      %165 = vector.extract_strided_slice %129 {offsets = [0, 56], sizes = [8, 8], strides = [1, 1]} : vector<8x64xf32> to vector<8x8xf32>
      %166 = arith.truncf %165 : vector<8x8xf32> to vector<8x8xbf16>
      %c3_82 = arith.constant 3 : index
      %c0_83 = arith.constant 0 : index
      %c0_84 = arith.constant 0 : index
      %167 = vector.load %arg20[%c3_82, %c0_83, %c0_84] : memref<4x8x8xbf16, #tpu.memory_space<vmem>>, vector<1x8x8xbf16>
      %168 = vector.shape_cast %167 : vector<1x8x8xbf16> to vector<8x8xbf16>
      %169 = vector.shape_cast %166 : vector<8x8xbf16> to vector<1x8x8xbf16>
      tpu.vector_store %arg20[%c3_82, %c0_83, %c0_84], %169 {strides = array<i32>} : memref<4x8x8xbf16, #tpu.memory_space<vmem>>, vector<1x8x8xbf16>,
    } else {
    }
    %c0 = arith.constant 0 : index
    %c0_1 = arith.constant 0 : index
    %c0_2 = arith.constant 0 : index
    %3 = vector.load %arg2[%c0, %c0_1, %c0_2] : memref<1x8x32xf32, #tpu.memory_space<vmem>>, vector<1x8x32xf32>
    %4 = vector.shape_cast %3 : vector<1x8x32xf32> to vector<8x32xf32>
    %5 = arith.truncf %4 : vector<8x32xf32> to vector<8x32xbf16>
    %c0_3 = arith.constant 0 : index
    %c0_4 = arith.constant 0 : index
    %6 = vector.load %arg4[%c0_3, %c0_4] : memref<32x32xbf16, #tpu.memory_space<vmem>>, vector<32x32xbf16>
    %cst = arith.constant dense<0.000000e+00> : vector<8x32xf32>
    %7 = tpu.matmul %5, %6, %cst {dimension_numbers = #tpu.dot_dimension_numbers<[1], [0], [0], [1], [0, 0, 1, 1], [], []>} : vector<8x32xbf16>, vector<32x32xbf16>, vector<8x32xf32> -> vector<8x32xf32>
    %c0_5 = arith.constant 0 : index
    %c0_6 = arith.constant 0 : index
    %8 = vector.load %arg5[%c0_5, %c0_6] : memref<1x32xf32, #tpu.memory_space<vmem>>, vector<1x32xf32>
    %9 = vector.broadcast %8 : vector<1x32xf32> to vector<8x32xf32>
    %10 = arith.addf %7, %9 : vector<8x32xf32>
    %cst_7 = arith.constant 0.176776692 : f32
    %11 = vector.broadcast %cst_7 : f32 to vector<8x32xf32>
    %12 = arith.mulf %10, %11 : vector<8x32xf32>
    %13 = vector.extract_strided_slice %12 {offsets = [0, 0], sizes = [8, 8], strides = [1, 1]} : vector<8x32xf32> to vector<8x8xf32>
    %14 = vector.shape_cast %13 : vector<8x8xf32> to vector<1x8x8xf32>
    %15 = vector.extract_strided_slice %12 {offsets = [0, 8], sizes = [8, 8], strides = [1, 1]} : vector<8x32xf32> to vector<8x8xf32>
    %16 = vector.shape_cast %15 : vector<8x8xf32> to vector<1x8x8xf32>
    %17 = vector.extract_strided_slice %12 {offsets = [0, 16], sizes = [8, 8], strides = [1, 1]} : vector<8x32xf32> to vector<8x8xf32>
    %18 = vector.shape_cast %17 : vector<8x8xf32> to vector<1x8x8xf32>
    %19 = vector.extract_strided_slice %12 {offsets = [0, 24], sizes = [8, 8], strides = [1, 1]} : vector<8x32xf32> to vector<8x8xf32>
    %20 = vector.shape_cast %19 : vector<8x8xf32> to vector<1x8x8xf32>
    %21 = tpu.concatenate %14, %16, %18, %20 in 0 : vector<1x8x8xf32>, vector<1x8x8xf32>, vector<1x8x8xf32>, vector<1x8x8xf32> -> vector<4x8x8xf32>
    %22 = arith.truncf %21 : vector<4x8x8xf32> to vector<4x8x8xbf16>
    %c0_8 = arith.constant 0 : index
    %c0_9 = arith.constant 0 : index
    %c0_10 = arith.constant 0 : index
    %23 = vector.load %arg19[%c0_8, %c0_9, %c0_10] : memref<4x8x8xbf16, #tpu.memory_space<vmem>>, vector<4x8x8xbf16>
    %c0_11 = arith.constant 0 : index
    %c0_12 = arith.constant 0 : index
    %c0_13 = arith.constant 0 : index
    %24 = vector.load %arg20[%c0_11, %c0_12, %c0_13] : memref<4x8x8xbf16, #tpu.memory_space<vmem>>, vector<4x8x8xbf16>
    "tpu.trace_start"() <{level = 10 : i32, message = "hqd,hkd->hqk"}> : () -> ()
    %cst_14 = arith.constant dense<0.000000e+00> : vector<4x8x8xf32>
    %25 = tpu.matmul %22, %23, %cst_14 {dimension_numbers = #tpu.dot_dimension_numbers<[2], [2], [1], [1], [0, 0, 0, 1, 1, 1], [0], [0]>} : vector<4x8x8xbf16>, vector<4x8x8xbf16>, vector<4x8x8xf32> -> vector<4x8x8xf32>
    "tpu.trace_stop"() : () -> ()
    %cst_15 = arith.constant dense<0xFF800000> : vector<4x8xf32>
    %26 = vector.multi_reduction <maximumf>, %25, %cst_15 [2] : vector<4x8x8xf32> to vector<4x8xf32>
    %27 = vector.shape_cast %26 : vector<4x8xf32> to vector<4x8x1xf32>
    %28 = vector.broadcast %27 : vector<4x8x1xf32> to vector<4x8x8xf32>
    %29 = arith.subf %25, %28 : vector<4x8x8xf32>
    %30 = math.exp %29 : vector<4x8x8xf32>
    %cst_16 = arith.constant dense<0.000000e+00> : vector<4x8xf32>
    %31 = vector.multi_reduction <add>, %30, %cst_16 [2] : vector<4x8x8xf32> to vector<4x8xf32>
    %32 = vector.shape_cast %31 : vector<4x8xf32> to vector<4x8x1xf32>
    %33 = tpu.reciprocal %32 {approx = true} : vector<4x8x1xf32> -> vector<4x8x1xf32>
    %34 = vector.broadcast %33 : vector<4x8x1xf32> to vector<4x8x8xf32>
    %35 = arith.mulf %30, %34 : vector<4x8x8xf32>
    %36 = arith.truncf %35 : vector<4x8x8xf32> to vector<4x8x8xbf16>
    "tpu.trace_start"() <{level = 10 : i32, message = "hqk,hkd->hqd"}> : () -> ()
    %cst_17 = arith.constant dense<0.000000e+00> : vector<4x8x8xf32>
    %37 = tpu.matmul %36, %24, %cst_17 {dimension_numbers = #tpu.dot_dimension_numbers<[2], [1], [1], [2], [0, 0, 0, 1, 1, 2], [0], [0]>} : vector<4x8x8xbf16>, vector<4x8x8xbf16>, vector<4x8x8xf32> -> vector<4x8x8xf32>
    "tpu.trace_stop"() : () -> ()
    %38 = vector.extract_strided_slice %37 {offsets = [0, 0, 0], sizes = [1, 8, 8], strides = [1, 1, 1]} : vector<4x8x8xf32> to vector<1x8x8xf32>
    %39 = vector.shape_cast %38 : vector<1x8x8xf32> to vector<8x8xf32>
    %40 = vector.extract_strided_slice %37 {offsets = [1, 0, 0], sizes = [1, 8, 8], strides = [1, 1, 1]} : vector<4x8x8xf32> to vector<1x8x8xf32>
    %41 = vector.shape_cast %40 : vector<1x8x8xf32> to vector<8x8xf32>
    %42 = vector.extract_strided_slice %37 {offsets = [2, 0, 0], sizes = [1, 8, 8], strides = [1, 1, 1]} : vector<4x8x8xf32> to vector<1x8x8xf32>
    %43 = vector.shape_cast %42 : vector<1x8x8xf32> to vector<8x8xf32>
    %44 = vector.extract_strided_slice %37 {offsets = [3, 0, 0], sizes = [1, 8, 8], strides = [1, 1, 1]} : vector<4x8x8xf32> to vector<1x8x8xf32>
    %45 = vector.shape_cast %44 : vector<1x8x8xf32> to vector<8x8xf32>
    %46 = tpu.concatenate %39, %41, %43, %45 in 1 : vector<8x8xf32>, vector<8x8xf32>, vector<8x8xf32>, vector<8x8xf32> -> vector<8x32xf32>
    %47 = arith.truncf %46 : vector<8x32xf32> to vector<8x32xbf16>
    %c0_18 = arith.constant 0 : index
    %c0_19 = arith.constant 0 : index
    %48 = vector.load %arg8[%c0_18, %c0_19] : memref<32x32xbf16, #tpu.memory_space<vmem>>, vector<32x32xbf16>
    %cst_20 = arith.constant dense<0.000000e+00> : vector<8x32xf32>
    %49 = tpu.matmul %47, %48, %cst_20 {dimension_numbers = #tpu.dot_dimension_numbers<[1], [0], [0], [1], [0, 0, 1, 1], [], []>} : vector<8x32xbf16>, vector<32x32xbf16>, vector<8x32xf32> -> vector<8x32xf32>
    %c0_21 = arith.constant 0 : index
    %c0_22 = arith.constant 0 : index
    %50 = vector.load %arg9[%c0_21, %c0_22] : memref<1x32xf32, #tpu.memory_space<vmem>>, vector<1x32xf32>
    %51 = vector.broadcast %50 : vector<1x32xf32> to vector<8x32xf32>
    %52 = arith.addf %49, %51 : vector<8x32xf32>
    %53 = arith.addf %52, %4 : vector<8x32xf32>
    %c0_23 = arith.constant 0 : index
    %c0_24 = arith.constant 0 : index
    %54 = vector.load %arg10[%c0_23, %c0_24] : memref<1x32xf32, #tpu.memory_space<vmem>>, vector<1x32xf32>
    %c0_25 = arith.constant 0 : index
    %c0_26 = arith.constant 0 : index
    %55 = vector.load %arg11[%c0_25, %c0_26] : memref<1x32xf32, #tpu.memory_space<vmem>>, vector<1x32xf32>
    %cst_27 = arith.constant dense<0.000000e+00> : vector<8xf32>
    %56 = vector.multi_reduction <add>, %53, %cst_27 [1] : vector<8x32xf32> to vector<8xf32>
    %57 = vector.shape_cast %56 : vector<8xf32> to vector<8x1xf32>
    %cst_28 = arith.constant 3.200000e+01 : f32
    %58 = vector.broadcast %cst_28 : f32 to vector<8x1xf32>
    %59 = arith.divf %57, %58 : vector<8x1xf32>
    %60 = vector.broadcast %59 : vector<8x1xf32> to vector<8x32xf32>
    %61 = arith.subf %53, %60 : vector<8x32xf32>
    %62 = arith.mulf %61, %61 : vector<8x32xf32>
    %cst_29 = arith.constant dense<0.000000e+00> : vector<8xf32>
    %63 = vector.multi_reduction <add>, %62, %cst_29 [1] : vector<8x32xf32> to vector<8xf32>
    %64 = vector.shape_cast %63 : vector<8xf32> to vector<8x1xf32>
    %cst_30 = arith.constant 3.200000e+01 : f32
    %65 = vector.broadcast %cst_30 : f32 to vector<8x1xf32>
    %66 = arith.divf %64, %65 : vector<8x1xf32>
    %cst_31 = arith.constant 9.99999974E-6 : f32
    %67 = vector.broadcast %cst_31 : f32 to vector<8x1xf32>
    %68 = arith.addf %66, %67 : vector<8x1xf32>
    %69 = math.rsqrt %68 : vector<8x1xf32>
    %70 = vector.broadcast %59 : vector<8x1xf32> to vector<8x32xf32>
    %71 = arith.subf %53, %70 : vector<8x32xf32>
    %72 = vector.broadcast %69 : vector<8x1xf32> to vector<8x32xf32>
    %73 = arith.mulf %71, %72 : vector<8x32xf32>
    %74 = vector.broadcast %54 : vector<1x32xf32> to vector<8x32xf32>
    %75 = arith.mulf %73, %74 : vector<8x32xf32>
    %76 = vector.broadcast %55 : vector<1x32xf32> to vector<8x32xf32>
    %77 = arith.addf %75, %76 : vector<8x32xf32>
    %78 = arith.truncf %77 : vector<8x32xf32> to vector<8x32xbf16>
    %c0_32 = arith.constant 0 : index
    %c0_33 = arith.constant 0 : index
    %79 = vector.load %arg12[%c0_32, %c0_33] : memref<32x64xbf16, #tpu.memory_space<vmem>>, vector<32x64xbf16>
    %cst_34 = arith.constant dense<0.000000e+00> : vector<8x64xf32>
    %80 = tpu.matmul %78, %79, %cst_34 {dimension_numbers = #tpu.dot_dimension_numbers<[1], [0], [0], [1], [0, 0, 1, 1], [], []>} : vector<8x32xbf16>, vector<32x64xbf16>, vector<8x64xf32> -> vector<8x64xf32>
    %c0_35 = arith.constant 0 : index
    %c0_36 = arith.constant 0 : index
    %81 = vector.load %arg13[%c0_35, %c0_36] : memref<1x64xf32, #tpu.memory_space<vmem>>, vector<1x64xf32>
    %82 = vector.broadcast %81 : vector<1x64xf32> to vector<8x64xf32>
    %83 = arith.addf %80, %82 : vector<8x64xf32>
    %cst_37 = arith.constant 0.000000e+00 : f32
    %84 = vector.broadcast %cst_37 : f32 to vector<8x64xf32>
    %85 = arith.maximumf %83, %84 : vector<8x64xf32>
    %86 = arith.truncf %85 : vector<8x64xf32> to vector<8x64xbf16>
    %c0_38 = arith.constant 0 : index
    %c0_39 = arith.constant 0 : index
    %87 = vector.load %arg14[%c0_38, %c0_39] : memref<64x32xbf16, #tpu.memory_space<vmem>>, vector<64x32xbf16>
    %cst_40 = arith.constant dense<0.000000e+00> : vector<8x32xf32>
    %88 = tpu.matmul %86, %87, %cst_40 {dimension_numbers = #tpu.dot_dimension_numbers<[1], [0], [0], [1], [0, 0, 1, 1], [], []>} : vector<8x64xbf16>, vector<64x32xbf16>, vector<8x32xf32> -> vector<8x32xf32>
    %c0_41 = arith.constant 0 : index
    %c0_42 = arith.constant 0 : index
    %89 = vector.load %arg15[%c0_41, %c0_42] : memref<1x32xf32, #tpu.memory_space<vmem>>, vector<1x32xf32>
    %90 = vector.broadcast %89 : vector<1x32xf32> to vector<8x32xf32>
    %91 = arith.addf %88, %90 : vector<8x32xf32>
    %cst_43 = arith.constant 0.000000e+00 : f32
    %92 = vector.broadcast %cst_43 : f32 to vector<8x32xf32>
    %93 = arith.maximumf %91, %92 : vector<8x32xf32>
    %94 = arith.addf %93, %77 : vector<8x32xf32>
    %c0_44 = arith.constant 0 : index
    %c0_45 = arith.constant 0 : index
    %95 = vector.load %arg16[%c0_44, %c0_45] : memref<1x32xf32, #tpu.memory_space<vmem>>, vector<1x32xf32>
    %c0_46 = arith.constant 0 : index
    %c0_47 = arith.constant 0 : index
    %96 = vector.load %arg17[%c0_46, %c0_47] : memref<1x32xf32, #tpu.memory_space<vmem>>, vector<1x32xf32>
    %cst_48 = arith.constant dense<0.000000e+00> : vector<8xf32>
    %97 = vector.multi_reduction <add>, %94, %cst_48 [1] : vector<8x32xf32> to vector<8xf32>
    %98 = vector.shape_cast %97 : vector<8xf32> to vector<8x1xf32>
    %cst_49 = arith.constant 3.200000e+01 : f32
    %99 = vector.broadcast %cst_49 : f32 to vector<8x1xf32>
    %100 = arith.divf %98, %99 : vector<8x1xf32>
    %101 = vector.broadcast %100 : vector<8x1xf32> to vector<8x32xf32>
    %102 = arith.subf %94, %101 : vector<8x32xf32>
    %103 = arith.mulf %102, %102 : vector<8x32xf32>
    %cst_50 = arith.constant dense<0.000000e+00> : vector<8xf32>
    %104 = vector.multi_reduction <add>, %103, %cst_50 [1] : vector<8x32xf32> to vector<8xf32>
    %105 = vector.shape_cast %104 : vector<8xf32> to vector<8x1xf32>
    %cst_51 = arith.constant 3.200000e+01 : f32
    %106 = vector.broadcast %cst_51 : f32 to vector<8x1xf32>
    %107 = arith.divf %105, %106 : vector<8x1xf32>
    %cst_52 = arith.constant 9.99999974E-6 : f32
    %108 = vector.broadcast %cst_52 : f32 to vector<8x1xf32>
    %109 = arith.addf %107, %108 : vector<8x1xf32>
    %110 = math.rsqrt %109 : vector<8x1xf32>
    %111 = vector.broadcast %100 : vector<8x1xf32> to vector<8x32xf32>
    %112 = arith.subf %94, %111 : vector<8x32xf32>
    %113 = vector.broadcast %110 : vector<8x1xf32> to vector<8x32xf32>
    %114 = arith.mulf %112, %113 : vector<8x32xf32>
    %115 = vector.broadcast %95 : vector<1x32xf32> to vector<8x32xf32>
    %116 = arith.mulf %114, %115 : vector<8x32xf32>
    %117 = vector.broadcast %96 : vector<1x32xf32> to vector<8x32xf32>
    %118 = arith.addf %116, %117 : vector<8x32xf32>
    %c0_53 = arith.constant 0 : index
    %c0_54 = arith.constant 0 : index
    %c0_55 = arith.constant 0 : index
    %119 = vector.load %arg18[%c0_53, %c0_54, %c0_55] : memref<1x8x32xf32, #tpu.memory_space<vmem>>, vector<1x8x32xf32>
    %120 = vector.shape_cast %119 : vector<1x8x32xf32> to vector<8x32xf32>
    %121 = vector.shape_cast %118 : vector<8x32xf32> to vector<1x8x32xf32>
    tpu.vector_store %arg18[%c0_53, %c0_54, %c0_55], %121 {strides = array<i32>} : memref<1x8x32xf32, #tpu.memory_space<vmem>>, vector<1x8x32xf32>,
    return
  }
  func.func @transform_0(%arg0: i32, %arg1: i32) -> (i32, i32, i32) {
    %c0_i32 = arith.constant 0 : i32
    %c0_i32_0 = arith.constant 0 : i32
    return %arg0, %arg1, %c0_i32 : i32, i32, i32
  }
  func.func @transform_1(%arg0: i32, %arg1: i32) -> (i32, i32, i32) {
    %c0_i32 = arith.constant 0 : i32
    %c0_i32_0 = arith.constant 0 : i32
    %c0_i32_1 = arith.constant 0 : i32
    return %arg0, %c0_i32, %c0_i32_0 : i32, i32, i32
  }
  func.func @transform_2(%arg0: i32, %arg1: i32) -> (i32, i32) {
    %c0_i32 = arith.constant 0 : i32
    %c0_i32_0 = arith.constant 0 : i32
    %c0_i32_1 = arith.constant 0 : i32
    return %c0_i32, %c0_i32_0 : i32, i32
  }
  func.func @transform_3(%arg0: i32, %arg1: i32) -> (i32, i32) {
    %c0_i32 = arith.constant 0 : i32
    %c0_i32_0 = arith.constant 0 : i32
    %c0_i32_1 = arith.constant 0 : i32
    return %c0_i32, %c0_i32_0 : i32, i32
  }
  func.func @transform_4(%arg0: i32, %arg1: i32) -> (i32, i32) {
    %c0_i32 = arith.constant 0 : i32
    %c0_i32_0 = arith.constant 0 : i32
    %c0_i32_1 = arith.constant 0 : i32
    return %c0_i32, %c0_i32_0 : i32, i32
  }
  func.func @transform_5(%arg0: i32, %arg1: i32) -> (i32, i32) {
    %c0_i32 = arith.constant 0 : i32
    %c0_i32_0 = arith.constant 0 : i32
    %c0_i32_1 = arith.constant 0 : i32
    return %c0_i32, %c0_i32_0 : i32, i32
  }
  func.func @transform_6(%arg0: i32, %arg1: i32) -> (i32, i32) {
    %c0_i32 = arith.constant 0 : i32
    %c0_i32_0 = arith.constant 0 : i32
    %c0_i32_1 = arith.constant 0 : i32
    return %c0_i32, %c0_i32_0 : i32, i32
  }
  func.func @transform_7(%arg0: i32, %arg1: i32) -> (i32, i32) {
    %c0_i32 = arith.constant 0 : i32
    %c0_i32_0 = arith.constant 0 : i32
    %c0_i32_1 = arith.constant 0 : i32
    return %c0_i32, %c0_i32_0 : i32, i32
  }
  func.func @transform_8(%arg0: i32, %arg1: i32) -> (i32, i32) {
    %c0_i32 = arith.constant 0 : i32
    %c0_i32_0 = arith.constant 0 : i32
    %c0_i32_1 = arith.constant 0 : i32
    return %c0_i32, %c0_i32_0 : i32, i32
  }
  func.func @transform_9(%arg0: i32, %arg1: i32) -> (i32, i32) {
    %c0_i32 = arith.constant 0 : i32
    %c0_i32_0 = arith.constant 0 : i32
    %c0_i32_1 = arith.constant 0 : i32
    return %c0_i32, %c0_i32_0 : i32, i32
  }
  func.func @transform_10(%arg0: i32, %arg1: i32) -> (i32, i32) {
    %c0_i32 = arith.constant 0 : i32
    %c0_i32_0 = arith.constant 0 : i32
    %c0_i32_1 = arith.constant 0 : i32
    return %c0_i32, %c0_i32_0 : i32, i32
  }
  func.func @transform_11(%arg0: i32, %arg1: i32) -> (i32, i32) {
    %c0_i32 = arith.constant 0 : i32
    %c0_i32_0 = arith.constant 0 : i32
    %c0_i32_1 = arith.constant 0 : i32
    return %c0_i32, %c0_i32_0 : i32, i32
  }
  func.func @transform_12(%arg0: i32, %arg1: i32) -> (i32, i32) {
    %c0_i32 = arith.constant 0 : i32
    %c0_i32_0 = arith.constant 0 : i32
    %c0_i32_1 = arith.constant 0 : i32
    return %c0_i32, %c0_i32_0 : i32, i32
  }
  func.func @transform_13(%arg0: i32, %arg1: i32) -> (i32, i32) {
    %c0_i32 = arith.constant 0 : i32
    %c0_i32_0 = arith.constant 0 : i32
    %c0_i32_1 = arith.constant 0 : i32
    return %c0_i32, %c0_i32_0 : i32, i32
  }
  func.func @transform_14(%arg0: i32, %arg1: i32) -> (i32, i32) {
    %c0_i32 = arith.constant 0 : i32
    %c0_i32_0 = arith.constant 0 : i32
    %c0_i32_1 = arith.constant 0 : i32
    return %c0_i32, %c0_i32_0 : i32, i32
  }
  func.func @transform_15(%arg0: i32, %arg1: i32) -> (i32, i32) {
    %c0_i32 = arith.constant 0 : i32
    %c0_i32_0 = arith.constant 0 : i32
    %c0_i32_1 = arith.constant 0 : i32
    return %c0_i32, %c0_i32_0 : i32, i32
  }
  func.func @transform_16(%arg0: i32, %arg1: i32) -> (i32, i32, i32) {
    %c0_i32 = arith.constant 0 : i32
    %c0_i32_0 = arith.constant 0 : i32
    return %arg0, %arg1, %c0_i32 : i32, i32, i32
  }
}

</mosaic_0001>

<bundles_post_ra>
// kernel: tpu_custom_call.1
= control target key start
LH: loop header
LB: loop body
LE: loop exit
PB: predicated region body
PF: predicated region fallthrough
CT: control target
= control target key end

     0   :  { %s3752_s0 = inlined_call_operand.hbm [shape: f32[2,8,32], index: 0, kind: input, shape index: {}]   ;;  %s3753_s1 = inlined_call_operand.hbm [shape: f32[2,8,32], index: 1, kind: input, shape index: {}]   ;;  %s3754_s2 = inlined_call_operand.hbm [shape: bf16[32,32], index: 2, kind: input, shape index: {}]   ;;  %s3755_s3 = inlined_call_operand.hbm [shape: f32[1,32], index: 3, kind: input, shape index: {}]   ;;  %s3756_s4 = inlined_call_operand.hbm [shape: bf16[32,64], index: 4, kind: input, shape index: {}]   ;;  %s3757_s5 = inlined_call_operand.hbm [shape: f32[1,64], index: 5, kind: input, shape index: {}]   ;;  %s3758_s6 = inlined_call_operand.hbm [shape: bf16[32,32], index: 6, kind: input, shape index: {}]   ;;  %s3759_s7 = inlined_call_operand.hbm [shape: f32[1,32], index: 7, kind: input, shape index: {}]   ;;  %s3760_s8 = inlined_call_operand.hbm [shape: f32[1,32], index: 8, kind: input, shape index: {}]   ;;  %s3761_s9 = inlined_call_operand.hbm [shape: f32[1,32], index: 9, kind: input, shape index: {}]   ;;  %s3762_s10 = inlined_call_operand.hbm [shape: bf16[32,64], index: 10, kind: input, shape index: {}]   ;;  %s3763_s11 = inlined_call_operand.hbm [shape: f32[1,64], index: 11, kind: input, shape index: {}]   ;;  %s3764_s12 = inlined_call_operand.hbm [shape: bf16[64,32], index: 12, kind: input, shape index: {}]   ;;  %s3765_s13 = inlined_call_operand.hbm [shape: f32[1,32], index: 13, kind: input, shape index: {}]   ;;  %s3766_s14 = inlined_call_operand.hbm [shape: f32[1,32], index: 14, kind: input, shape index: {}]   ;;  %s3767_s15 = inlined_call_operand.hbm [shape: f32[1,32], index: 15, kind: input, shape index: {}]   ;;  %s3768_s16 = inlined_call_operand.hbm [shape: f32[2,8,32], index: 16, kind: output, shape index: {}]  }
   0x1   :  { %3785 = sst [smem:[#allocation49_spill]] %s3752_s0 }
   0x2   :  { %3786 = sst [smem:[#allocation50_spill]] %s3753_s1 }
   0x3   :  { %3787 = sst [smem:[#allocation51_spill]] %s3754_s2 }
   0x4   :  { %3788 = sst [smem:[#allocation52_spill]] %s3755_s3 }
   0x5   :  { %3789 = sst [smem:[#allocation53_spill]] %s3756_s4 }
   0x6   :  { %3790 = sst [smem:[#allocation54_spill]] %s3757_s5 }
   0x7   :  { %3791 = sst [smem:[#allocation55_spill]] %s3758_s6 }
   0x8   :  { %3792 = sst [smem:[#allocation56_spill]] %s3759_s7 }
   0x9   :  { %3793 = sst [smem:[#allocation57_spill]] %s3760_s8 }
   0xa   :  { %3794 = sst [smem:[#allocation58_spill]] %s3768_s16 }
   0xb   :  { %21 = vsyncpa [#allocation5], 0 }
   0xc   :  { %23 = vsyncpa [#allocation5 + $0x1], 0 }
   0xd   :  { %24 = vsyncpa [#allocation8], 0 }
   0xe   :  { %26 = vsyncpa [#allocation8 + $0x1], 0 }
   0xf   :  { %27 = vsyncpa [#allocation11], 0 }
  0x10   :  { %28 = vsyncpa [#allocation14], 0 }
  0x11   :  { %29 = vsyncpa [#allocation17], 0 }
  0x12   :  { %30 = vsyncpa [#allocation20], 0 }
  0x13   :  { %31 = vsyncpa [#allocation23], 0 }
  0x14   :  { %32 = vsyncpa [#allocation26], 0 }
  0x15   :  { %33 = vsyncpa [#allocation29], 0 }
  0x16   :  { %34 = vsyncpa [#allocation6], 0 }
  0x17   :  { %36 = vsyncpa [#allocation6 + $0x1], 0  ;;  %s3097_s21 = smov 0   ;;  %s3099_s22 = smov 0  }
  0x18   :  { %s3101_s23 = smov 0   ;;  %s3103_s24 = smov 0  }
  0x19   :  { %s3105_s25 = smov 0   ;;  %s3107_s26 = smov 0  }
  0x1a LB: > { %3795 = sst [smem:[#allocation42_spill]] %s2959_s21  ;;  %s3128_s27 = sadd.s32 4294967295, %s2979_s26   ;;  %s2979_s26 = sphi %s3107_s26, %s42_s26   ;;  %s2975_s25 = sphi %s3105_s25, %s3858_s25   ;;  %s2971_s24 = sphi %s3103_s24, %s3856_s24   ;;  %s2967_s23 = sphi %s3101_s23, %s3857_s23   ;;  %s2963_s22 = sphi %s3099_s22, %s3855_s22   ;;  %s2959_s21 = sphi %s3097_s21, %s3854_s21  }
  0x1b   : > { %3796 = sst [smem:[#allocation43_spill]] %s2963_s22  ;;  %p1952_p0 = scmp.ge.s32.totalorder %s2979_s26, 1 }
  0x1c   : > { %3797 = sst [smem:[#allocation44_spill]] %s2967_s23  ;;  %p3779_p1 = scmp.eq.s32.totalorder %s3128_s27, 0 }
  0x1d   : > { %3798 = sst [smem:[#allocation45_spill]] %s2971_s24  ;;  %p435_p2 = scmp.lt.s32.totalorder %s2979_s26, 3 }
  0x1e   : > { %3799 = sst [smem:[#allocation46_spill]] %s2975_s25  ;;  %s2981_s29 = smov [#allocation9]  }
  0x1f   : > { %3800 = sst [smem:[#allocation47_spill]] %s3128_s27  ;;  %p3133_p3 = pnand %p1952_p0, %p435_p2 }
  0x20   : > { %s447_s30 = sshll.u32 %s2981_s29, 4  ;;  %s2982_s17 = smov [#allocation10]   ;;  %s3137_s30 = int_to_ptr.vmem [resolvable:$true] %s447_s30 }
  0x21   : > { %s3801_s28 = scalar_select %p3133_p3, 1, 0 }
  0x22   : > { %p2217_p4 = pneg %p3133_p3  ;;  %s461_s18 = sshll.u32 %s2982_s17, 4  ;;  %s3148_s18 = int_to_ptr.vmem [resolvable:$true] %s461_s18 }
  0x23   : > { %3802 = sst [smem:[#allocation48_spill]] %s3801_s28  ;;  %s2983_s19 = smov [#allocation13]  }
  0x24   : > { %p3144_p6 = pnand %p2217_p4, %p3779_p1  ;;  %s3150_s20 = sshll.u32 %s2983_s19, 4  ;;  %s486_s20 = int_to_ptr.vmem [resolvable:$true] %s3150_s20 }
  0x25   : > { %s3804_s2 = sld [smem:[#allocation51_spill]] }
  0x26   : > { %p3160_p8 = pneg %p3144_p6 }
  0x2b   : > { %s2409_s24 = scalar_lea.hbm %s3804_s2, 256 }
  0x2c   : > { %p2410_p7 = scmp.ne.s32.totalorder %s3804_s2, %s2409_s24  ;;  %p2416_p11 = scmp.lt.u32.totalorder %s2409_s24, %s3804_s2 }
  0x2e   : > { %p2412_p9 = pnand %p3160_p8, %p2410_p7 }
  0x30   : > { %p2413_p10 = pneg %p2412_p9 }
  0x32   : > { %p2418_p12 = pnand %p2416_p11, %p2413_p10 }
  0x34   : > { %2421 = shalt.err (!%p2418_p12)
}
  0x35   : > { %s2422_s1 = scalar_lea.vmem %s3137_s30, 256  ;;  %p2430_p4 = scmp.lt.s32.totalorder %s3137_s30, %s3137_s30 }
  0x36   : > { %p2423_p13 = scmp.ne.s32.totalorder %s3137_s30, %s2422_s1  ;;  %p2431_p5 = scmp.lt.s32.totalorder %s2422_s1, %s2422_s1 }
  0x38   : > { %p2425_p0 = pnand %p2423_p13, %p3160_p8  ;;  %p2432_p7 = por %p2431_p5, %p2430_p4 }
  0x3a   : > { %p2426_p2 = pneg %p2425_p0 }
  0x3c   : > { %p2433_p9 = pnand %p2432_p7, %p2426_p2 }
  0x3e   : > { %2436 = shalt.err (!%p2433_p9)
}
  0x3f   : > { %s3781_s16 = smov 64   ;;  %s2985_s24 = smov 4  }
  0x40   : > { %2220 = dma.hbm_to_vmem [thread:$0]  (!%p3144_p6), %s3804_s2, 256, %s3137_s30, [#allocation8], %s3781_s16, %s3781_s16, %s2985_s24  }
  0x41   : > { %s3806_s3 = sld [smem:[#allocation52_spill]] }
  0x47   : > { %s2437_s1 = scalar_lea.hbm %s3806_s3, 16 }
  0x48   : > { %p2438_p5 = scmp.ne.s32.totalorder %s3806_s3, %s2437_s1  ;;  %p2444_p12 = scmp.lt.u32.totalorder %s2437_s1, %s3806_s3 }
  0x4a   : > { %p2440_p10 = pnand %p2438_p5, %p3160_p8 }
  0x4c   : > { %p2441_p11 = pneg %p2440_p10 }
  0x4e   : > { %p2446_p13 = pnand %p2444_p12, %p2441_p11 }
  0x50   : > { %2449 = shalt.err (!%p2446_p13)
}
  0x51   : > { %s2450_s30 = scalar_lea.vmem %s3148_s18, 16  ;;  %s2457_s21 = scalar_lea.vmem %s3148_s18, 32 }
  0x52   : > { %p2451_p0 = scmp.ne.s32.totalorder %s3148_s18, %s2450_s30  ;;  %p2458_p7 = scmp.lt.s32.totalorder %s3148_s18, %s3148_s18 }
  0x53   : > { %p2459_p9 = scmp.lt.s32.totalorder %s2457_s21, %s2450_s30 }
  0x54   : > { %p2453_p2 = pnand %p2451_p0, %p3160_p8 }
  0x55   : > { %p2460_p5 = por %p2459_p9, %p2458_p7 }
  0x56   : > { %p2454_p4 = pneg %p2453_p2 }
  0x58   : > { %p2461_p10 = pnand %p2460_p5, %p2454_p4 }
  0x5a   : > { %2464 = shalt.err (!%p2461_p10)
}
  0x5b   : > { %2223 = dma.hbm_to_vmem [thread:$0]  (!%p3144_p6), %s3806_s3, 16, %s3148_s18, [#allocation11]  }
  0x5c   : > { %s3807_s5 = sld [smem:[#allocation54_spill]] }
  0x62   : > { %s2465_s29 = scalar_lea.hbm %s3807_s5, 16 }
  0x63   : > { %p2466_p11 = scmp.ne.s32.totalorder %s3807_s5, %s2465_s29  ;;  %p2472_p0 = scmp.lt.u32.totalorder %s2465_s29, %s3807_s5 }
  0x65   : > { %p2468_p12 = pnand %p2466_p11, %p3160_p8 }
  0x67   : > { %p2469_p13 = pneg %p2468_p12 }
  0x69   : > { %p2474_p2 = pnand %p2472_p0, %p2469_p13 }
  0x6b   : > { %2477 = shalt.err (!%p2474_p2)
}
  0x6c   : > { %s2478_s21 = scalar_lea.vmem %s486_s20, 16  ;;  %s2485_s18 = scalar_lea.vmem %s486_s20, 32 }
  0x6d   : > { %p2479_p4 = scmp.ne.s32.totalorder %s486_s20, %s2478_s21  ;;  %p2486_p5 = scmp.lt.s32.totalorder %s486_s20, %s486_s20 }
  0x6e   : > { %p2487_p10 = scmp.lt.s32.totalorder %s2485_s18, %s2478_s21 }
  0x6f   : > { %p2481_p7 = pnand %p2479_p4, %p3160_p8 }
  0x70   : > { %p2488_p1 = por %p2487_p10, %p2486_p5 }
  0x71   : > { %p2482_p9 = pneg %p2481_p7 }
  0x73   : > { %p2489_p3 = pnand %p2488_p1, %p2482_p9 }
  0x75   : > { %2492 = shalt.err (!%p2489_p3)
}
  0x76   : > { %2229 = dma.hbm_to_vmem [thread:$0]  (!%p3144_p6), %s3807_s5, 16, %s486_s20, [#allocation14]  }
  0x77   : > { %s2986_s25 = smov [#allocation16]   ;;  %s2987_s29 = smov [#allocation19]  }
  0x78   : > { %s509_s28 = sshll.u32 %s2986_s25, 4  ;;  %s531_s17 = sshll.u32 %s2987_s29, 4  ;;  %s510_s28 = int_to_ptr.vmem [resolvable:$true] %s509_s28  ;;  %s532_s17 = int_to_ptr.vmem [resolvable:$true] %s531_s17 }
  0x79   : > { %s3808_s7 = sld [smem:[#allocation56_spill]] }
  0x7f   : > { %s2493_s30 = scalar_lea.hbm %s3808_s7, 16 }
  0x80   : > { %p2494_p1 = scmp.ne.s32.totalorder %s3808_s7, %s2493_s30  ;;  %p2500_p12 = scmp.lt.u32.totalorder %s2493_s30, %s3808_s7 }
  0x82   : > { %p2496_p3 = pnand %p2494_p1, %p3160_p8 }
  0x84   : > { %p2497_p11 = pneg %p2496_p3 }
  0x86   : > { %p2502_p13 = pnand %p2500_p12, %p2497_p11 }
  0x88   : > { %2505 = shalt.err (!%p2502_p13)
}
  0x89   : > { %s2506_s20 = scalar_lea.vmem %s510_s28, 16  ;;  %s2513_s23 = scalar_lea.vmem %s510_s28, 32 }
  0x8a   : > { %p2507_p0 = scmp.ne.s32.totalorder %s510_s28, %s2506_s20  ;;  %p2514_p7 = scmp.lt.s32.totalorder %s510_s28, %s510_s28 }
  0x8b   : > { %p2515_p9 = scmp.lt.s32.totalorder %s2513_s23, %s2506_s20 }
  0x8c   : > { %p2509_p2 = pnand %p2507_p0, %p3160_p8 }
  0x8d   : > { %p2516_p5 = por %p2515_p9, %p2514_p7 }
  0x8e   : > { %p2510_p4 = pneg %p2509_p2 }
  0x90   : > { %p2517_p10 = pnand %p2516_p5, %p2510_p4 }
  0x92   : > { %2520 = shalt.err (!%p2517_p10)
}
  0x93   : > { %2235 = dma.hbm_to_vmem [thread:$0]  (!%p3144_p6), %s3808_s7, 16, %s510_s28, [#allocation17]  }
  0x94   : > { %s2521_s1 = scalar_lea.hbm %s3761_s9, 16 }
  0x95   : > { %p2522_p1 = scmp.ne.s32.totalorder %s3761_s9, %s2521_s1  ;;  %p2528_p12 = scmp.lt.u32.totalorder %s2521_s1, %s3761_s9 }
  0x97   : > { %p2524_p3 = pnand %p2522_p1, %p3160_p8 }
  0x99   : > { %p2525_p11 = pneg %p2524_p3 }
  0x9b   : > { %p2530_p13 = pnand %p2528_p12, %p2525_p11 }
  0x9d   : > { %2533 = shalt.err (!%p2530_p13)
}
  0x9e   : > { %s2534_s20 = scalar_lea.vmem %s532_s17, 16  ;;  %s2541_s28 = scalar_lea.vmem %s532_s17, 32 }
  0x9f   : > { %p2535_p0 = scmp.ne.s32.totalorder %s532_s17, %s2534_s20  ;;  %p2542_p7 = scmp.lt.s32.totalorder %s532_s17, %s532_s17 }
  0xa0   : > { %p2543_p9 = scmp.lt.s32.totalorder %s2541_s28, %s2534_s20 }
  0xa1   : > { %p2537_p2 = pnand %p2535_p0, %p3160_p8 }
  0xa2   : > { %p2544_p5 = por %p2543_p9, %p2542_p7 }
  0xa3   : > { %p2538_p4 = pneg %p2537_p2 }
  0xa5   : > { %p2545_p10 = pnand %p2544_p5, %p2538_p4 }
  0xa7   : > { %2548 = shalt.err (!%p2545_p10)
}
  0xa8   : > { %2241 = dma.hbm_to_vmem [thread:$0]  (!%p3144_p6), %s3761_s9, 16, %s532_s17, [#allocation20]  }
  0xa9   : > { %s2988_s29 = smov [#allocation22]   ;;  %s2989_s19 = smov [#allocation25]  }
  0xaa   : > { %s555_s16 = sshll.u32 %s2988_s29, 4  ;;  %s579_s1 = sshll.u32 %s2989_s19, 4  ;;  %s556_s16 = int_to_ptr.vmem [resolvable:$true] %s555_s16  ;;  %s580_s1 = int_to_ptr.vmem [resolvable:$true] %s579_s1 }
  0xab   : > { %s2549_s18 = scalar_lea.hbm %s3763_s11, 16 }
  0xac   : > { %p2550_p1 = scmp.ne.s32.totalorder %s3763_s11, %s2549_s18  ;;  %p2556_p12 = scmp.lt.u32.totalorder %s2549_s18, %s3763_s11 }
  0xae   : > { %p2552_p3 = pnand %p2550_p1, %p3160_p8 }
  0xb0   : > { %p2553_p11 = pneg %p2552_p3 }
  0xb2   : > { %p2558_p13 = pnand %p2556_p12, %p2553_p11 }
  0xb4   : > { %2561 = shalt.err (!%p2558_p13)
}
  0xb5   : > { %s2562_s17 = scalar_lea.vmem %s556_s16, 16  ;;  %s2569_s25 = scalar_lea.vmem %s556_s16, 32 }
  0xb6   : > { %p2563_p0 = scmp.ne.s32.totalorder %s556_s16, %s2562_s17  ;;  %p2570_p7 = scmp.lt.s32.totalorder %s556_s16, %s556_s16 }
  0xb7   : > { %p2571_p9 = scmp.lt.s32.totalorder %s2569_s25, %s2562_s17 }
  0xb8   : > { %p2565_p2 = pnand %p2563_p0, %p3160_p8 }
  0xb9   : > { %p2572_p5 = por %p2571_p9, %p2570_p7 }
  0xba   : > { %p2566_p4 = pneg %p2565_p2 }
  0xbc   : > { %p2573_p10 = pnand %p2572_p5, %p2566_p4 }
  0xbe   : > { %2576 = shalt.err (!%p2573_p10)
}
  0xbf   : > { %2247 = dma.hbm_to_vmem [thread:$0]  (!%p3144_p6), %s3763_s11, 16, %s556_s16, [#allocation23]  }
  0xc0   : > { %s2577_s18 = scalar_lea.hbm %s3765_s13, 16 }
  0xc1   : > { %p2578_p1 = scmp.ne.s32.totalorder %s3765_s13, %s2577_s18  ;;  %p2584_p12 = scmp.lt.u32.totalorder %s2577_s18, %s3765_s13 }
  0xc3   : > { %p2580_p3 = pnand %p2578_p1, %p3160_p8 }
  0xc5   : > { %p2581_p11 = pneg %p2580_p3 }
  0xc7   : > { %p2586_p13 = pnand %p2584_p12, %p2581_p11 }
  0xc9   : > { %2589 = shalt.err (!%p2586_p13)
}
  0xca   : > { %s2590_s17 = scalar_lea.vmem %s580_s1, 16  ;;  %s2597_s16 = scalar_lea.vmem %s580_s1, 32 }
  0xcb   : > { %p2591_p0 = scmp.ne.s32.totalorder %s580_s1, %s2590_s17  ;;  %p2598_p7 = scmp.lt.s32.totalorder %s580_s1, %s580_s1 }
  0xcc   : > { %p2599_p9 = scmp.lt.s32.totalorder %s2597_s16, %s2590_s17 }
  0xcd   : > { %p2593_p2 = pnand %p2591_p0, %p3160_p8 }
  0xce   : > { %p2600_p5 = por %p2599_p9, %p2598_p7 }
  0xcf   : > { %p2594_p4 = pneg %p2593_p2 }
  0xd1   : > { %p2601_p10 = pnand %p2600_p5, %p2594_p4 }
  0xd3   : > { %2604 = shalt.err (!%p2601_p10)
}
  0xd4   : > { %2253 = dma.hbm_to_vmem [thread:$0]  (!%p3144_p6), %s3765_s13, 16, %s580_s1, [#allocation26]  }
  0xd5   : > { %s2990_s19 = smov [#allocation12]   ;;  %s2991_s21 = smov [#allocation15]  }
  0xd6   : > { %s471_s30 = sshll.u32 %s2990_s19, 4  ;;  %s495_s18 = sshll.u32 %s2991_s21, 4  ;;  %s472_s30 = int_to_ptr.vmem [resolvable:$true] %s471_s30  ;;  %s496_s18 = int_to_ptr.vmem [resolvable:$true] %s495_s18 }
  0xd7   : > { %s3809_s4 = sld [smem:[#allocation53_spill]] }
  0xdd   : > { %s2605_s28 = scalar_lea.hbm %s3809_s4, 256 }
  0xde   : > { %p2606_p1 = scmp.ne.s32.totalorder %s3809_s4, %s2605_s28  ;;  %p2612_p12 = scmp.lt.u32.totalorder %s2605_s28, %s3809_s4 }
  0xe0   : > { %p2608_p3 = pnand %p2606_p1, %p3160_p8 }
  0xe2   : > { %p2609_p11 = pneg %p2608_p3 }
  0xe4   : > { %p2614_p13 = pnand %p2612_p12, %p2609_p11 }
  0xe6   : > { %2617 = shalt.err (!%p2614_p13)
}
  0xe7   : > { %s2618_s1 = scalar_lea.vmem %s472_s30, 256  ;;  %p2626_p7 = scmp.lt.s32.totalorder %s472_s30, %s472_s30 }
  0xe8   : > { %p2619_p0 = scmp.ne.s32.totalorder %s472_s30, %s2618_s1  ;;  %p2627_p9 = scmp.lt.s32.totalorder %s2618_s1, %s2618_s1 }
  0xea   : > { %p2621_p2 = pnand %p2619_p0, %p3160_p8  ;;  %p2628_p5 = por %p2627_p9, %p2626_p7 }
  0xec   : > { %p2622_p4 = pneg %p2621_p2 }
  0xee   : > { %p2629_p10 = pnand %p2628_p5, %p2622_p4 }
  0xf0   : > { %2632 = shalt.err (!%p2629_p10)
}
  0xf1   : > { %s3810_s29 = smov 64   ;;  %s3811_s6 = sld [smem:[#allocation55_spill]] }
  0xf2   : > { %2226 = dma.hbm_to_vmem [thread:$0]  (!%p3144_p6), %s3809_s4, 256, %s472_s30, [#allocation11], %s3810_s29, %s3810_s29, %s2985_s24  }
  0xf7   : > { %s2633_s28 = scalar_lea.hbm %s3811_s6, 256 }
  0xf8   : > { %p2634_p1 = scmp.ne.s32.totalorder %s3811_s6, %s2633_s28  ;;  %p2640_p12 = scmp.lt.u32.totalorder %s2633_s28, %s3811_s6 }
  0xfa   : > { %p2636_p3 = pnand %p2634_p1, %p3160_p8 }
  0xfc   : > { %p2637_p11 = pneg %p2636_p3 }
  0xfe   : > { %p2642_p13 = pnand %p2640_p12, %p2637_p11 }
 0x100   : > { %2645 = shalt.err (!%p2642_p13)
}
 0x101   : > { %s2646_s1 = scalar_lea.vmem %s496_s18, 256  ;;  %p2654_p7 = scmp.lt.s32.totalorder %s496_s18, %s496_s18 }
 0x102   : > { %p2647_p0 = scmp.ne.s32.totalorder %s496_s18, %s2646_s1  ;;  %p2655_p9 = scmp.lt.s32.totalorder %s2646_s1, %s2646_s1 }
 0x104   : > { %p2649_p2 = pnand %p2647_p0, %p3160_p8  ;;  %p2656_p5 = por %p2655_p9, %p2654_p7 }
 0x106   : > { %p2650_p4 = pneg %p2649_p2 }
 0x108   : > { %p2657_p10 = pnand %p2656_p5, %p2650_p4 }
 0x10a   : > { %2660 = shalt.err (!%p2657_p10)
}
 0x10b   : > { %2232 = dma.hbm_to_vmem [thread:$0]  (!%p3144_p6), %s3811_s6, 256, %s496_s18, [#allocation14], %s3810_s29, %s3810_s29, %s2985_s24  }
 0x10c   : > { %s2992_s21 = smov [#allocation18]   ;;  %s2993_s20 = smov [#allocation21]  }
 0x10d   : > { %s520_s22 = sshll.u32 %s2992_s21, 4  ;;  %s541_s28 = sshll.u32 %s2993_s20, 4  ;;  %s521_s22 = int_to_ptr.vmem [resolvable:$true] %s520_s22  ;;  %s542_s28 = int_to_ptr.vmem [resolvable:$true] %s541_s28 }
 0x10e   : > { %s3812_s8 = sld [smem:[#allocation57_spill]] }
 0x114   : > { %s2661_s16 = scalar_lea.hbm %s3812_s8, 16 }
 0x115   : > { %p2662_p1 = scmp.ne.s32.totalorder %s3812_s8, %s2661_s16  ;;  %p2668_p12 = scmp.lt.u32.totalorder %s2661_s16, %s3812_s8 }
 0x117   : > { %p2664_p3 = pnand %p2662_p1, %p3160_p8 }
 0x119   : > { %p2665_p11 = pneg %p2664_p3 }
 0x11b   : > { %p2670_p13 = pnand %p2668_p12, %p2665_p11 }
 0x11d   : > { %2673 = shalt.err (!%p2670_p13)
}
 0x11e   : > { %s2674_s18 = scalar_lea.vmem %s521_s22, 16  ;;  %s2681_s19 = scalar_lea.vmem %s521_s22, 32 }
 0x11f   : > { %p2675_p0 = scmp.ne.s32.totalorder %s521_s22, %s2674_s18  ;;  %p2682_p7 = scmp.lt.s32.totalorder %s521_s22, %s521_s22 }
 0x120   : > { %p2683_p9 = scmp.lt.s32.totalorder %s2681_s19, %s2674_s18 }
 0x121   : > { %p2677_p2 = pnand %p2675_p0, %p3160_p8 }
 0x122   : > { %p2684_p5 = por %p2683_p9, %p2682_p7 }
 0x123   : > { %p2678_p4 = pneg %p2677_p2 }
 0x125   : > { %p2685_p10 = pnand %p2684_p5, %p2678_p4 }
 0x127   : > { %2688 = shalt.err (!%p2685_p10)
}
 0x128   : > { %2238 = dma.hbm_to_vmem [thread:$0]  (!%p3144_p6), %s3812_s8, 16, %s521_s22, [#allocation17]  }
 0x129   : > { %s2689_s17 = scalar_lea.hbm %s3762_s10, 256 }
 0x12a   : > { %p2690_p1 = scmp.ne.s32.totalorder %s3762_s10, %s2689_s17  ;;  %p2696_p12 = scmp.lt.u32.totalorder %s2689_s17, %s3762_s10 }
 0x12c   : > { %p2692_p3 = pnand %p2690_p1, %p3160_p8 }
 0x12e   : > { %p2693_p11 = pneg %p2692_p3 }
 0x130   : > { %p2698_p13 = pnand %p2696_p12, %p2693_p11 }
 0x132   : > { %2701 = shalt.err (!%p2698_p13)
}
 0x133   : > { %s2702_s18 = scalar_lea.vmem %s542_s28, 256  ;;  %p2710_p7 = scmp.lt.s32.totalorder %s542_s28, %s542_s28 }
 0x134   : > { %p2703_p0 = scmp.ne.s32.totalorder %s542_s28, %s2702_s18  ;;  %p2711_p9 = scmp.lt.s32.totalorder %s2702_s18, %s2702_s18 }
 0x136   : > { %p2705_p2 = pnand %p2703_p0, %p3160_p8  ;;  %p2712_p5 = por %p2711_p9, %p2710_p7 }
 0x138   : > { %p2706_p4 = pneg %p2705_p2 }
 0x13a   : > { %p2713_p10 = pnand %p2712_p5, %p2706_p4 }
 0x13c   : > { %2716 = shalt.err (!%p2713_p10)
}
 0x13d   : > { %2244 = dma.hbm_to_vmem [thread:$0]  (!%p3144_p6), %s3762_s10, 256, %s542_s28, [#allocation20], %s3810_s29, %s3810_s29, %s2985_s24  }
 0x13e   : > { %s2994_s21 = smov [#allocation24]   ;;  %s2995_s2 = smov [#allocation27]  }
 0x13f   : > { %s565_s20 = sshll.u32 %s2994_s21, 4  ;;  %s590_s23 = sshll.u32 %s2995_s2, 4  ;;  %s566_s20 = int_to_ptr.vmem [resolvable:$true] %s565_s20  ;;  %s591_s23 = int_to_ptr.vmem [resolvable:$true] %s590_s23 }
 0x140   : > { %s2717_s25 = scalar_lea.hbm %s3764_s12, 512 }
 0x141   : > { %p2718_p1 = scmp.ne.s32.totalorder %s3764_s12, %s2717_s25  ;;  %p2724_p12 = scmp.lt.u32.totalorder %s2717_s25, %s3764_s12 }
 0x143   : > { %p2720_p3 = pnand %p2718_p1, %p3160_p8 }
 0x145   : > { %p2721_p11 = pneg %p2720_p3 }
 0x147   : > { %p2726_p13 = pnand %p2724_p12, %p2721_p11 }
 0x149   : > { %2729 = shalt.err (!%p2726_p13)
}
 0x14a   : > { %s2730_s28 = scalar_lea.vmem %s566_s20, 512  ;;  %p2738_p7 = scmp.lt.s32.totalorder %s566_s20, %s566_s20 }
 0x14b   : > { %p2731_p0 = scmp.ne.s32.totalorder %s566_s20, %s2730_s28  ;;  %p2739_p9 = scmp.lt.s32.totalorder %s2730_s28, %s2730_s28 }
 0x14d   : > { %p2733_p2 = pnand %p2731_p0, %p3160_p8  ;;  %p2740_p5 = por %p2739_p9, %p2738_p7 }
 0x14f   : > { %p2734_p4 = pneg %p2733_p2 }
 0x151   : > { %p2741_p10 = pnand %p2740_p5, %p2734_p4 }
 0x153   : > { %2744 = shalt.err (!%p2741_p10)
}
 0x154   : > { %2250 = dma.hbm_to_vmem [thread:$0]  (!%p3144_p6), %s3764_s12, 512, %s566_s20, [#allocation23], %s3810_s29, %s3810_s29, %s2985_s24  }
 0x155   : > { %s2745_s16 = scalar_lea.hbm %s3766_s14, 16 }
 0x156   : > { %p2746_p1 = scmp.ne.s32.totalorder %s3766_s14, %s2745_s16  ;;  %p2752_p12 = scmp.lt.u32.totalorder %s2745_s16, %s3766_s14 }
 0x158   : > { %p2748_p3 = pnand %p2746_p1, %p3160_p8 }
 0x15a   : > { %p2749_p11 = pneg %p2748_p3 }
 0x15c   : > { %p2754_p13 = pnand %p2752_p12, %p2749_p11 }
 0x15e   : > { %2757 = shalt.err (!%p2754_p13)
}
 0x15f   : > { %s2758_s22 = scalar_lea.vmem %s591_s23, 16  ;;  %s2765_s24 = scalar_lea.vmem %s591_s23, 32 }
 0x160   : > { %p2759_p0 = scmp.ne.s32.totalorder %s591_s23, %s2758_s22  ;;  %p2766_p7 = scmp.lt.s32.totalorder %s591_s23, %s591_s23 }
 0x161   : > { %p2767_p9 = scmp.lt.s32.totalorder %s2765_s24, %s2758_s22 }
 0x162   : > { %p2761_p2 = pnand %p2759_p0, %p3160_p8 }
 0x163   : > { %p2768_p5 = por %p2767_p9, %p2766_p7 }
 0x164   : > { %p2762_p4 = pneg %p2761_p2 }
 0x166   : > { %p2769_p10 = pnand %p2768_p5, %p2762_p4 }
 0x168   : > { %2772 = shalt.err (!%p2769_p10)
}
 0x169   : > { %2256 = dma.hbm_to_vmem [thread:$0]  (!%p3144_p6), %s3766_s14, 16, %s591_s23, [#allocation26]  }
 0x16a   : > { %s2996_s28 = smov [#allocation28]   ;;  %s2773_s17 = scalar_lea.hbm %s3767_s15, 16 }
 0x16b   : > { %s601_s19 = sshll.u32 %s2996_s28, 4  ;;  %p2774_p1 = scmp.ne.s32.totalorder %s3767_s15, %s2773_s17  ;;  %s602_s19 = int_to_ptr.vmem [resolvable:$true] %s601_s19 }
 0x16c   : > { %p2780_p12 = scmp.lt.u32.totalorder %s2773_s17, %s3767_s15 }
 0x16d   : > { %p2776_p3 = pnand %p2774_p1, %p3160_p8 }
 0x16f   : > { %p2777_p11 = pneg %p2776_p3 }
 0x171   : > { %p2782_p13 = pnand %p2780_p12, %p2777_p11 }
 0x173   : > { %2785 = shalt.err (!%p2782_p13)
}
 0x174   : > { %s2786_s23 = scalar_lea.vmem %s602_s19, 16  ;;  %s2793_s18 = scalar_lea.vmem %s602_s19, 32 }
 0x175   : > { %p2787_p0 = scmp.ne.s32.totalorder %s602_s19, %s2786_s23  ;;  %p2794_p7 = scmp.lt.s32.totalorder %s602_s19, %s602_s19 }
 0x176   : > { %p2795_p9 = scmp.lt.s32.totalorder %s2793_s18, %s2786_s23 }
 0x177   : > { %p2789_p2 = pnand %p2787_p0, %p3160_p8 }
 0x178   : > { %p2796_p5 = por %p2795_p9, %p2794_p7 }
 0x179   : > { %p2790_p4 = pneg %p2789_p2 }
 0x17b   : > { %p2797_p10 = pnand %p2796_p5, %p2790_p4 }
 0x17d   : > { %2800 = shalt.err (!%p2797_p10)
}
 0x17e   : > { %s3813_s29 = sld [smem:[#allocation46_spill]]  ;;  %s3814_s20 = sld [smem:[#allocation44_spill]] }
 0x17f   : > { %s3815_s28 = sld [smem:[#allocation43_spill]]  ;;  %s3816_s27 = sld [smem:[#allocation42_spill]] }
 0x180   : > { %s3817_s21 = sld [smem:[#allocation47_spill]]  ;;  %s1951_s2 = sadd.s32 4294967294, %s2979_s26  }
 0x181   : > { %2259 = dma.hbm_to_vmem [thread:$0]  (!%p3144_p6), %s3767_s15, 16, %s602_s19, [#allocation29]  }
 0x182   : > { %p71_p3 = scmp.eq.s32.totalorder %s2979_s26, 0  ;;  %p428_p7 = scmp.eq.s32.totalorder %s1951_s2, 1 }
 0x183   : > { %p2285_p5 = scmp.lt.s32.totalorder %s2979_s26, 2 }
 0x184   : > { %s54_s17 = sadd.s32 1, %s3813_s29  ;;  %s63_s0 = sadd.s32 1, %s3814_s20 }
 0x185   : > { %p56_p8 = scmp.ge.s32.totalorder %s54_s17, 2  ;;  %p70_p1 = scmp.ne.s32.totalorder %s3814_s20, %s3815_s28 }
 0x186   : > { %p76_p12 = scmp.ne.s32.totalorder %s3815_s28, %s3816_s27  ;;  %p422_p6 = scmp.eq.s32.totalorder %s3817_s21, 1 }
 0x187   : > { %s3860_s17 = smov (%p56_p8, %s54_s17), 0  ;;  %p3445_p11 = por %p71_p3, %p70_p1 }
 0x188   : > { %s58_s19 = ssub.s32 %s3813_s29, %s3860_s17  ;;  %p3819_p0 = scmp.eq.s32.totalorder %s3817_s21, 0 }
 0x189   : > { %p61_p13 = scmp.eq.s32.totalorder %s58_s19, 0  ;;  %p3460_p4 = por %p422_p6, %p70_p1 }
 0x18a   : > { %p3456_p2 = por %p3819_p0, %p76_p12  ;;  %p3467_p9 = por %p428_p7, %p76_p12 }
 0x18b   : > { %s3821_s1 = scalar_select %p3460_p4, 1, 0 }
 0x18c   : > { %s3820_s25 = scalar_select %p3456_p2, 1, 0 }
 0x18d   : > { %s3465_s30 = scalar_select %p61_p13, %s3814_s20, %s63_s0  }
 0x18e   : > { %s3822_s23 = scalar_select %p3467_p9, 1, 0 }
 0x18f   : > { %s612_s18 = sand.u32 1, %s3814_s20   ;;  %s1969_s22 = sshll.u32 %s3813_s29, 7 }
 0x190   : > { %s3474_s24 = sshll.u32 %s612_s18, 3  ;;  %s3823_s21 = sld [smem:[#allocation49_spill]] }
 0x191   : > { %s616_s2 = scalar_lea.vmem [#allocation4], %s3474_s24  ;;  %p3484_p10 = pnand %p2285_p5, %p3445_p11 }
 0x192   : > { %s624_s0 = sshll.u32 %s616_s2, 4  ;;  %s3826_s28 = sld [smem:[#allocation50_spill]]  ;;  %s3488_s0 = int_to_ptr.vmem [resolvable:$true] %s624_s0 }
 0x193   : > { %p2803_p1 = pneg %p3484_p10 }
 0x196   : > { %s3824_s19 = smov %s3823_s21  ;;  %s3479_s3 = scalar_lea.hbm %s3823_s21, %s1969_s22 }
 0x197   : > { %s613_s21 = scalar_lea.sflag [#allocation5], %s612_s18  ;;  %s2801_s5 = scalar_lea.hbm %s3479_s3, 128 }
 0x198   : > { %s3493_s27 = scalar_lea.hbm %s3826_s28, %s1969_s22  ;;  %p2802_p8 = scmp.ne.s32.totalorder %s3479_s3, %s2801_s5 }
 0x199   : > { %s2806_s6 = scalar_lea.hbm %s3824_s19, 256  ;;  %p2807_p12 = scmp.lt.u32.totalorder %s3479_s3, %s3824_s19 }
 0x19a   : > { %p2804_p3 = pnand %p2803_p1, %p2802_p8  ;;  %p2808_p6 = scmp.lt.u32.totalorder %s2806_s6, %s2801_s5 }
 0x19b   : > { %p2810_p0 = scmp.lt.u32.totalorder %s2801_s5, %s3479_s3 }
 0x19c   : > { %p2805_p11 = pneg %p2804_p3  ;;  %p2809_p13 = por %p2808_p6, %p2807_p12 }
 0x19e   : > { %p2811_p7 = por %p2810_p0, %p2809_p13 }
 0x1a0   : > { %p2812_p5 = pnand %p2811_p7, %p2805_p11 }
 0x1a2   : > { %2815 = shalt.err (!%p2812_p5)
}
 0x1a3   : > { %s2816_s18 = scalar_lea.vmem %s3488_s0, 128  ;;  %s2997_s22 = smov [#allocation4]  }
 0x1a4   : > { %p2817_p8 = scmp.ne.s32.totalorder %s3488_s0, %s2816_s18  ;;  %s2821_s29 = sshll.u32 %s2997_s22, 4  ;;  %s2822_s29 = int_to_ptr.vmem [resolvable:$false] %s2821_s29 }
 0x1a5   : > { %s2823_s7 = scalar_lea.vmem %s2822_s29, 256  ;;  %p2824_p4 = scmp.lt.s32.totalorder %s3488_s0, %s2822_s29 }
 0x1a6   : > { %p2819_p3 = pnand %p2817_p8, %p2803_p1  ;;  %p2825_p12 = scmp.lt.s32.totalorder %s2823_s7, %s2816_s18 }
 0x1a8   : > { %p2820_p9 = pneg %p2819_p3  ;;  %p2826_p6 = por %p2825_p12, %p2824_p4 }
 0x1aa   : > { %p2827_p13 = pnand %p2826_p6, %p2820_p9 }
 0x1ac   : > { %2830 = shalt.err (!%p2827_p13)
}
 0x1ad   : > { %2263 = dma.hbm_to_vmem [thread:$0]  (!%p3484_p10), %s3479_s3, 128, %s3488_s0, %s613_s21  }
 0x1ae   : > { %s631_s5 = sand.u32 1, %s2979_s26   ;;  %s635_s6 = scalar_lea.vmem [#allocation7], %s3474_s24 }
 0x1af   : > { %s642_s8 = sshll.u32 %s635_s6, 4  ;;  %s632_s20 = scalar_lea.sflag [#allocation8], %s631_s5  ;;  %s643_s8 = int_to_ptr.vmem [resolvable:$true] %s642_s8 }
 0x1b0   : > { %s2831_s16 = scalar_lea.hbm %s3493_s27, 128  ;;  %s2836_s22 = scalar_lea.hbm %s3826_s28, 256 }
 0x1b1   : > { %p2832_p4 = scmp.ne.s32.totalorder %s3493_s27, %s2831_s16  ;;  %p2837_p0 = scmp.lt.u32.totalorder %s3493_s27, %s3826_s28 }
 0x1b2   : > { %p2838_p7 = scmp.lt.u32.totalorder %s2836_s22, %s2831_s16  ;;  %p2840_p8 = scmp.lt.u32.totalorder %s2831_s16, %s3493_s27 }
 0x1b3   : > { %p2834_p9 = pnand %p2832_p4, %p2803_p1 }
 0x1b4   : > { %p2839_p5 = por %p2838_p7, %p2837_p0 }
 0x1b5   : > { %p2835_p11 = pneg %p2834_p9 }
 0x1b6   : > { %p2841_p3 = por %p2840_p8, %p2839_p5 }
 0x1b8   : > { %p2842_p12 = pnand %p2841_p3, %p2835_p11 }
 0x1ba   : > { %2845 = shalt.err (!%p2842_p12)
}
 0x1bb   : > { %s2846_s3 = scalar_lea.vmem %s643_s8, 128  ;;  %s2998_s24 = smov [#allocation7]  }
 0x1bc   : > { %p2847_p6 = scmp.ne.s32.totalorder %s643_s8, %s2846_s3  ;;  %s2851_s0 = sshll.u32 %s2998_s24, 4  ;;  %s2852_s0 = int_to_ptr.vmem [resolvable:$false] %s2851_s0 }
 0x1bd   : > { %s2853_s21 = scalar_lea.vmem %s2852_s0, 256  ;;  %p2854_p9 = scmp.lt.s32.totalorder %s643_s8, %s2852_s0 }
 0x1be   : > { %p2849_p13 = pnand %p2847_p6, %p2803_p1  ;;  %p2855_p2 = scmp.lt.s32.totalorder %s2853_s21, %s2846_s3 }
 0x1c0   : > { %p2850_p4 = pneg %p2849_p13  ;;  %p2856_p0 = por %p2855_p2, %p2854_p9 }
 0x1c2   : > { %p2857_p7 = pnand %p2856_p0, %p2850_p4 }
 0x1c4   : > { %2860 = shalt.err (!%p2857_p7)
}
 0x1c5   : > { %2266 = dma.hbm_to_vmem [thread:$0]  (!%p3484_p10), %s3493_s27, 128, %s643_s8, %s632_s20  }
 0x1c6   : > { %s3827_s5 = sld [smem:[#allocation48_spill]] }
 0x1cc   : > { %p3828_p11 = scmp.ne.s32.totalorder %s3827_s5, 0 }
 0x1cd   : > { %s3829_s6 = sld [smem:[#allocation43_spill]] (!%p3828_p11)  ;;  %p3830_p2 = scmp.ne.s32.totalorder (!%p3828_p11), %s3820_s25, 0 }
 0x1ce   : > { %651 = sbr.rel (%p3828_p11) target bundleno = 3031 (0xbd7), region = 84 }
 0x1d3   : > { %s3544_s16 = sand.u32 (!%p3828_p11), 1, %s3829_s6  }
 0x1d4   : > { %s3547_s2 = sshll.u32 (!%p3828_p11), %s3544_s16, 3  ;;  %s654_s18 = scalar_lea.sflag (!%p3828_p11), [#allocation5], %s3544_s16 }
 0x1d5   : > { %s657_s22 = scalar_lea.vmem [#allocation4], %s3547_s2 }
 0x1d6   : > { %2914 = dma.done.wait (%p3830_p2), %s654_s18, 128  }
 0x1d7   : > { %2916 = vsyncadd (%p3830_p2), %s654_s18, 4294967168  ;;  %s3831_s4 = sld [smem:[#allocation47_spill]]  ;;  %s666_s20 = scalar_lea.vmem [#allocation7], %s3547_s2 }
 0x1dd   : > { %s662_s27 = sand.u32 1, %s3831_s4  }
 0x1de   : > { %s663_s8 = scalar_lea.sflag [#allocation8], %s662_s27 }
 0x1df   : > { %2918 = dma.done.wait (%p3830_p2), %s663_s8, 128  }
 0x1e0   : > { %2920 = vsyncadd (%p3830_p2), %s663_s8, 4294967168  ;;  %p3832_p10 = scmp.eq.s32.totalorder %s3831_s4, 0 }
 0x1e2   : > { %2922 = dma.done.wait (%p3832_p10), [#allocation8], 256   ;;  %p3833_p1 = pmov %p3832_p10 }
 0x1e4   : > { %2924 = vsyncadd (%p3833_p1), [#allocation8], 4294967040  ;;  %p3834_p5 = pmov %p3833_p1 }
 0x1e5   : > { %p3835_p8 = pmov %p3833_p1 }
 0x1e6   : > { %2926 = dma.done.wait (%p3834_p5), [#allocation11], 272  }
 0x1e7   : > { %2928 = vsyncadd (%p3835_p8), [#allocation11], 4294967024  ;;  %p3836_p3 = pmov %p3833_p1 }
 0x1e8   : > { %p3837_p12 = pmov %p3833_p1 }
 0x1e9   : > { %2930 = dma.done.wait (%p3836_p3), [#allocation14], 272  }
 0x1ea   : > { %2932 = vsyncadd (%p3837_p12), [#allocation14], 4294967024  ;;  %p3838_p6 = pmov %p3833_p1 }
 0x1eb   : > { %p3839_p13 = pmov %p3833_p1 }
 0x1ec   : > { %2934 = dma.done.wait (%p3838_p6), [#allocation17], 32  }
 0x1ed   : > { %2936 = vsyncadd (%p3839_p13), [#allocation17], 4294967264  ;;  %p3840_p4 = pmov %p3833_p1 }
 0x1ee   : > { %p3841_p9 = pmov %p3833_p1 }
 0x1ef   : > { %2938 = dma.done.wait (%p3840_p4), [#allocation20], 272  }
 0x1f0   : > { %2940 = vsyncadd (%p3841_p9), [#allocation20], 4294967024  ;;  %p3842_p0 = pmov %p3833_p1 }
 0x1f2   : > { %2942 = dma.done.wait (%p3842_p0), [#allocation23], 528   ;;  %p3843_p7 = pmov %p3842_p0 }
 0x1f3   : > { %p3844_p11 = pmov %p3842_p0 }
 0x1f4   : > { %2944 = vsyncadd (%p3843_p7), [#allocation23], 4294966768 }
 0x1f5   : > { %2946 = dma.done.wait (%p3844_p11), [#allocation26], 32   ;;  %p3845_p2 = pmov %p3842_p0 }
 0x1f6   : > { %p3846_p10 = pmov %p3842_p0 }
 0x1f7   : > { %2948 = vsyncadd (%p3845_p2), [#allocation26], 4294967264 }
 0x1f8   : > { %2950 = dma.done.wait (%p3846_p10), [#allocation29], 16   ;;  %p3847_p1 = pmov %p3842_p0 }
 0x1f9   : > { %v2999_v0 = vmov 0.0   ;;  %vm3000_vm0 = vmmov 0   ;;  %v2377_v1 = vld [vmem:[#allocation12] sm:$0xff]   ;;  %v2378_v2 = vld [vmem:[#allocation12 + $0x8] sm:$0xff]   ;;  %vm806_vm1 = vcmask 261120   ;;  %v2380_v6 = vld [vmem:[#allocation9 + $0x8] sm:$0xff]  }
 0x1fa   : > { %2952 = vsyncadd (%p3847_p1), [#allocation29], 4294967280  ;;  %2063 = vmatprep.subr.bf16.mxu1 %v2999_v0  ;;  %2067 = vmatprep.mubr.msk.bf16.mxu1 %vm3000_vm0, %v2999_v0  ;;  %v781_v3 = vld [vmem:[%s666_s20] sm:$0xff]  ;;  %v2379_v4 = vld [vmem:[#allocation9] sm:$0xff]   ;;  %vm851_vm2 = vcmask 60416   ;;  %s3001_s25 = smov 104  }
 0x1fb   : > { %2079 = vmatprep.subr.bf16.mxu0 %v2999_v0  ;;  %2081 = vmatprep.mubr.msk.bf16.mxu0 %vm3000_vm0, %v2999_v0  ;;  %v782_v5 = vpack.c.bf16 %v781_v3, %v781_v3  ;;  %v3606_v7 = vld [vmem:[%s657_s22] sm:$0xff]  ;;  %s3002_s29 = smov 120   ;;  %v1995_v16 = vld [vmem:[#allocation10] ss:$0 sm:$0xff]  ;;  %s3003_s7 = smov 112   ;;  %vm982_vm3 = vcmask 64512  }
 0x1fc   : > { %2064 = vmatpush3.bf16.msra.mxu1 %v2377_v1  ;;  %v891_v8 = vpack.c.bf16 %v3606_v7, %v3606_v7  ;;  %v1990_v9 = vld [vmem:[#allocation13] ss:$0 sm:$0xff]  ;;  %s3004_s3 = smov 96   ;;  %vm1218_vm4 = vcmask 1043456   ;;  %s3005_s24 = smov 80   ;;  %vm1413_vm5 = vcmask 130048  }
 0x1fd   : > { %2065 = vmatprep.subr.bf16.mxu1 %v2999_v0  ;;  %s3006_s0 = smov 72   ;;  %s3007_s21 = smov 88   ;;  %vm1415_vm6 = vcmask 195584   ;;  %vm1623_vm7 = vcmask 523264  }
 0x1fe   : > { %s3008_s5 = smov 16   ;;  %s3009_s6 = smov 8  }
 0x1ff   : > { %s3010_s18 = smov 24   ;;  %s3848_s22 = sld [smem:[#allocation45_spill]] }
 0x200   : > { %2066 = vmatpush3.bf16.msra.mxu1 %v2378_v2  ;;  %s775_s27 = scalar_lea.vmem [#allocation30], %s3547_s2  ;;  %p3850_p8 = scmp.ne.s32.totalorder %s3821_s1, 0 }
 0x201   : > { %2071 = vmatprep.subr.bf16.mxu1 %v2999_v0  ;;  %s1714_s8 = sshll.u32 %s775_s27, 4  ;;  %s3011_s2 = smov [#allocation30]   ;;  %s3704_s8 = int_to_ptr.vmem [resolvable:$true] %s1714_s8 }
 0x203   : > { %2068 = vmatmul.mubr.msk.bf16.vlgmr.msra.gmra.mrb[0].mxu1 %vm806_vm1, %v782_v5 }
 0x204   : > { %2072 = vmatpush3.bf16.msra.mxu1 %v2379_v4  ;;  %2075 = vmatprep.mubr.msk.bf16.mxu1 %vm3000_vm0, %v2999_v0 }
 0x205   : > { %2073 = vmatprep.subr.bf16.mxu1 %v2999_v0  ;;  %s2026_s4 = sshll.u32 %s3848_s22, 7 }
 0x208   : > { %2074 = vmatpush3.bf16.msra.mxu1 %v2380_v6 }
 0x209   : > { %2085 = vmatprep.subr.bf16.mxu1 %v2999_v0 }
 0x20b   : > { %2076 = vmatmul.mubr.msk.bf16.vlgmr.msra.gmra.mrb[4].mxu1 %vm806_vm1, %v891_v8 }
 0x20c   : > { %2087 = vmatprep.mubr.msk.bf16.mxu1 %vm3000_vm0, %v2999_v0 }
 0x2d6   : > { %v844_v10 = vpop.f32.mrb[0].mxu1 }
 0x2d7   : > { %v845_v11 = vadd.f32 %v1990_v9, %v844_v10  ;;  %v2069_v12 = vpop.f32.mrb[1].mxu1 }
 0x2d8   : > { %v847_v13 = vpop.f32.mrb[2].mxu1 }
 0x2d9   : > { %v3615_v14 = vpack.c.bf16 %v845_v11, %v845_v11  ;;  %v2070_v15 = vpop.f32.mrb[3].mxu1 }
 0x2db   : > { %852 = vst.msk [vmem:[#allocation2] sm:$0xf] %vm851_vm2, %v3615_v14  ;;  %880 = vrot.lane.b32.xlu1 %v3615_v14, %s3001_s25  ;;  %860 = vrot.lane.b32.xlu0 %v3615_v14, %s3002_s29 }
 0x2de   : > { %v953_v17 = vpop.f32.mrb[4].mxu1 }
 0x2df   : > { %870 = vrot.lane.b32.xlu0 %v3615_v14, %s3003_s7  ;;  %v954_v18 = vadd.f32 %v1995_v16, %v953_v17  ;;  %v2077_v19 = vpop.f32.mrb[5].mxu1 }
 0x2e0   : > { %v956_v20 = vpop.f32.mrb[6].mxu1 }
 0x2e1   : > { %v959_v21 = vmul.f32 0.17677669, %v954_v18  ;;  %v2078_v22 = vpop.f32.mrb[7].mxu1 }
 0x2e2   : > { %v974_v23 = vld [vmem:[#allocation2] sm:$0xf] }
 0x2e3   : > { %v987_v24 = vsel %vm982_vm3, %v974_v23, 0  ;;  %961 = vrot.lane.b32.xlu1 %v959_v21, %s3002_s29  ;;  %964 = vrot.lane.b32.xlu0 %v959_v21, %s3003_s7  ;;  %v970_v25 = vpack.c.bf16 %v959_v21, %v959_v21  ;;  %s3849_s29 = sld [smem:[#allocation58_spill]] }
 0x2e4   : > { %2080 = vmatpush3.bf16.xpose.msra.mxu0 %v987_v24 }
 0x2e5   : > { %2091 = vmatprep.subr.bf16.mxu0 %v2999_v0 }
 0x2e7   : > { %967 = vrot.lane.b32.xlu1 %v959_v21, %s3001_s25 }
 0x2e9   : > { %s3702_s7 = scalar_lea.hbm %s3849_s29, %s2026_s4 }
 0x2eb   : > { %2082 = vmatmul.mubr.msk.bf16.vlgmr.msra.gmra.mrb[0].mxu0 %vm982_vm3, %v970_v25 }
 0x2ec   : > { %2093 = vmatprep.mubr.msk.bf16.mxu0 %vm3000_vm0, %v2999_v0 }
 0x34d   : > { %v881_v26 = vpop.permute.xlu1 %880  ;;  %v861_v27 = vpop.permute.xlu0 %860 }
 0x34e   : > { %884 = vst.msk [vmem:[#allocation2 + $0xc] sm:$0xf] %vm851_vm2, %v881_v26  ;;  %864 = vst.msk [vmem:[#allocation2 + $0x4] sm:$0xf] %vm851_vm2, %v861_v27 }
 0x351   : > { %v871_v28 = vpop.permute.xlu0 %870 }
 0x352   : > { %874 = vst.msk [vmem:[#allocation2 + $0x8] sm:$0xf] %vm851_vm2, %v871_v28 }
 0x355   : > { %v975_v29 = vld [vmem:[#allocation2 + $0x4] sm:$0xf]  ;;  %v962_v31 = vpop.permute.xlu1 %961  ;;  %v977_v35 = vld [vmem:[#allocation2 + $0xc] sm:$0xf]  ;;  %v965_v36 = vpop.permute.xlu0 %964 }
 0x356   : > { %v1033_v30 = vsel %vm982_vm3, %v975_v29, 0  ;;  %v971_v33 = vpack.c.bf16 %v962_v31, %v962_v31  ;;  %v1125_v37 = vsel %vm982_vm3, %v977_v35, 0  ;;  %v972_v38 = vpack.c.bf16 %v965_v36, %v965_v36 }
 0x357   : > { %2086 = vmatpush3.bf16.xpose.msra.mxu1 %v1033_v30 }
 0x358   : > { %2097 = vmatprep.subr.bf16.mxu1 %v2999_v0 }
 0x359   : > { %v976_v32 = vld [vmem:[#allocation2 + $0x8] sm:$0xf]  ;;  %v968_v39 = vpop.permute.xlu1 %967 }
 0x35a   : > { %v1079_v34 = vsel %vm982_vm3, %v976_v32, 0  ;;  %v973_v40 = vpack.c.bf16 %v968_v39, %v968_v39 }
 0x35b   : > { %2092 = vmatpush3.bf16.xpose.msra.mxu0 %v1079_v34 }
 0x35c   : > { %2103 = vmatprep.subr.bf16.mxu0 %v2999_v0 }
 0x35e   : > { %2088 = vmatmul.mubr.msk.bf16.vlgmr.msra.gmra.mrb[8].mxu1 %vm982_vm3, %v971_v33 }
 0x35f   : > { %2098 = vmatpush3.bf16.xpose.msra.mxu1 %v1125_v37  ;;  %2099 = vmatprep.mubr.msk.bf16.mxu1 %vm3000_vm0, %v2999_v0 }
 0x360   : > { %2109 = vmatprep.subr.bf16.mxu1 %v2999_v0 }
 0x362   : > { %2094 = vmatmul.mubr.msk.bf16.vlgmr.msra.gmra.mrb[4].mxu0 %vm982_vm3, %v972_v38 }
 0x363   : > { %2105 = vmatprep.mubr.msk.bf16.mxu0 %vm3000_vm0, %v2999_v0 }
 0x366   : > { %2100 = vmatmul.mubr.msk.bf16.vlgmr.msra.gmra.mrb[12].mxu1 %vm982_vm3, %v973_v40 }
 0x367   : > { %2111 = vmatprep.mubr.msk.bf16.mxu1 %vm3000_vm0, %v2999_v0 }
 0x3be   : > { %v1023_v41 = vpop.f32.mrb[0].mxu0 }
 0x3bf   : > { %v2083_v42 = vpop.f32.mrb[1].mxu0  ;;  %v1167_v43 = vsel %vm982_vm3, %v1023_v41, -inf }
 0x3c0   : > { %1168 = vmax.xlane.f32.xlu0 %v1167_v43  ;;  %v1026_v44 = vpop.f32.mrb[2].mxu0 }
 0x3c1   : > { %v2084_v45 = vpop.f32.mrb[3].mxu0 }
 0x431   : > { %v1069_v46 = vpop.f32.mrb[8].mxu1 }
 0x432   : > { %v2089_v47 = vpop.f32.mrb[9].mxu1  ;;  %v1170_v48 = vsel %vm982_vm3, %v1069_v46, -inf }
 0x433   : > { %1171 = vmax.xlane.f32.xlu1 %v1170_v48  ;;  %v1072_v49 = vpop.f32.mrb[10].mxu1 }
 0x434   : > { %v2090_v50 = vpop.f32.mrb[11].mxu1 }
 0x435   : > { %v1115_v51 = vpop.f32.mrb[4].mxu0 }
 0x436   : > { %v2095_v52 = vpop.f32.mrb[5].mxu0  ;;  %v1173_v53 = vsel %vm982_vm3, %v1115_v51, -inf }
 0x437   : > { %1174 = vmax.xlane.f32.xlu0 %v1173_v53  ;;  %v1118_v54 = vpop.f32.mrb[6].mxu0  ;;  %v2382_v52 = vld [vmem:[#allocation15 + $0x8] sm:$0xff]  }
 0x438   : > { %v2096_v55 = vpop.f32.mrb[7].mxu0 }
 0x439   : > { %v1161_v56 = vpop.f32.mrb[12].mxu1 }
 0x43a   : > { %v2101_v57 = vpop.f32.mrb[13].mxu1  ;;  %v1176_v58 = vsel %vm982_vm3, %v1161_v56, -inf }
 0x43b   : > { %1177 = vmax.xlane.f32.xlu0 %v1176_v58  ;;  %v1164_v59 = vpop.f32.mrb[14].mxu1 }
 0x43c   : > { %v2102_v60 = vpop.f32.mrb[15].mxu1 }
 0x444   : > { %856 = vrot.lane.b32.xlu1 %v3615_v14, %s3004_s3  ;;  %s1700_s3 = scalar_lea.sflag [#allocation6], %s3544_s16 }
 0x44d   : > { %v1169_v61 = vpop.xlane.xlu0 %1168 }
 0x44e   : > { %v1179_v62 = vsub.f32 %v1023_v41, %v1169_v61 }
 0x450   : > { %v1183_v63 = vmul.f32 1.442695, %v1179_v62 }
 0x452   : > { %2389 = vpow2.f32 %v1183_v63 }
 0x45c   : > { %v2390_v1 = vpop.eup %2389 }
 0x45d   : > { %v1191_v2 = vsel %vm982_vm3, %v2390_v1, 0.0 }
 0x468   : > { %1192 = vadd.xlane.f32.xlu1 %v1191_v2 }
 0x4c0   : > { %v1172_v3 = vpop.xlane.xlu1 %1171 }
 0x4c1   : > { %v1180_v4 = vsub.f32 %v1069_v46, %v1172_v3 }
 0x4c3   : > { %v1185_v5 = vmul.f32 1.442695, %v1180_v4 }
 0x4c4   : > { %v1175_v6 = vpop.xlane.xlu0 %1174  ;;  %v857_v8 = vpop.permute.xlu1 %856 }
 0x4c5   : > { %2391 = vpow2.f32 %v1185_v5  ;;  %v1181_v9 = vsub.f32 %v1115_v51, %v1175_v6  ;;  %859 = vst.msk [vmem:[#allocation3] sm:$0xf] %vm851_vm2, %v857_v8  ;;  %v2381_v51 = vld [vmem:[#allocation15] sm:$0xff]  }
 0x4c7   : > { %v1187_v10 = vmul.f32 1.442695, %v1181_v9 }
 0x4c8   : > { %v1178_v11 = vpop.xlane.xlu0 %1177 }
 0x4c9   : > { %2393 = vpow2.f32 %v1187_v10  ;;  %v1182_v12 = vsub.f32 %v1161_v56, %v1178_v11  ;;  %v2007_v10 = vld [vmem:[#allocation16] ss:$0 sm:$0xff] }
 0x4cb   : > { %v1189_v13 = vmul.f32 1.442695, %v1182_v12 }
 0x4cc   : > { %v978_v15 = vld [vmem:[#allocation3] sm:$0xf] }
 0x4cd   : > { %2395 = vpow2.f32 %v1189_v13  ;;  %v1220_v16 = vsel %vm1218_vm4, %v978_v15, 0 }
 0x4ce   : > { %2104 = vmatpush3.bf16.msra.mxu0 %v1220_v16 }
 0x4cf   : > { %v2392_v17 = vpop.eup %2391  ;;  %2115 = vmatprep.subr.bf16.mxu0 %v2999_v0 }
 0x4d0   : > { %v1194_v18 = vsel %vm982_vm3, %v2392_v17, 0.0 }
 0x4d1   : > { %1195 = vadd.xlane.f32.xlu0 %v1194_v18 }
 0x4d3   : > { %v2394_v19 = vpop.eup %2393 }
 0x4d4   : > { %v1197_v20 = vsel %vm982_vm3, %v2394_v19, 0.0 }
 0x4d5   : > { %1198 = vadd.xlane.f32.xlu1 %v1197_v20 }
 0x4d7   : > { %v2396_v21 = vpop.eup %2395 }
 0x4d8   : > { %v1200_v22 = vsel %vm982_vm3, %v2396_v21, 0.0 }
 0x4d9   : > { %1201 = vadd.xlane.f32.xlu0 %v1200_v22 }
 0x4e6   : > { %875 = vrot.lane.b32.xlu1 %v3615_v14, %s3005_s24  ;;  %s2861_s24 = scalar_lea.vmem %s3704_s8, 128 }
 0x4e7   : > { %p2862_p5 = scmp.ne.s32.totalorder %s3704_s8, %s2861_s24 }
 0x4e9   : > { %p2863_p3 = pnand %p2862_p5, %p3850_p8 }
 0x4ea   : > { %885 = vrot.lane.b32.xlu1 %v3615_v14, %s3006_s0  ;;  %s2865_s0 = sshll.u32 %s3011_s2, 4  ;;  %s2866_s0 = int_to_ptr.vmem [resolvable:$false] %s2865_s0 }
 0x4eb   : > { %p2864_p12 = pneg %p2863_p3  ;;  %p2868_p6 = scmp.lt.s32.totalorder %s3704_s8, %s2866_s0 }
 0x4ef   : > { %865 = vrot.lane.b32.xlu0 %v3615_v14, %s3007_s21  ;;  %s2867_s21 = scalar_lea.vmem %s2866_s0, 256 }
 0x4f0   : > { %p2869_p13 = scmp.lt.s32.totalorder %s2867_s21, %s2861_s24 }
 0x4f2   : > { %p2870_p4 = por %p2869_p13, %p2868_p6 }
 0x4f4   : > { %p2871_p9 = pnand %p2870_p4, %p2864_p12 }
 0x4f5   : > { %v1193_v23 = vpop.xlane.xlu1 %1192 }
 0x4f6   : > { %2397 = vrcp.f32 %v1193_v23 }
 0x500   : > { %v2398_v24 = vpop.eup %2397 }
 0x501   : > { %v1207_v25 = vmul.f32 %v2398_v24, %v2390_v1  ;;  %v2383_v24 = vld [vmem:[#allocation21] sm:$0xff]  }
 0x503   : > { %v1211_v26 = vpack.c.bf16 %v1207_v25, %v1207_v25  ;;  %v2384_v25 = vld [vmem:[#allocation21 + $0x8] sm:$0xff]  }
 0x505   : > { %2106 = vmatmul.mubr.msk.bf16.vlgmr.msra.gmra.mrb[8].mxu0 %vm982_vm3, %v1211_v26  ;;  %v2385_v26 = vld [vmem:[#allocation24] sm:$0xff]  }
 0x506   : > { %2117 = vmatprep.mubr.msk.bf16.mxu0 %vm3000_vm0, %v2999_v0 }
 0x55e   : > { %v1196_v27 = vpop.xlane.xlu0 %1195 }
 0x562   : > { %v1199_v28 = vpop.xlane.xlu1 %1198 }
 0x563   : > { %2399 = vrcp.f32 %v1199_v28 }
 0x564   : > { %2401 = vrcp.f32 %v1196_v27  ;;  %v2386_v27 = vld [vmem:[#allocation24 + $0x8] sm:$0xff]  }
 0x566   : > { %v876_v29 = vpop.permute.xlu1 %875  ;;  %v1202_v30 = vpop.xlane.xlu0 %1201 }
 0x567   : > { %879 = vst.msk [vmem:[#allocation3 + $0x8] sm:$0xf] %vm851_vm2, %v876_v29  ;;  %2403 = vrcp.f32 %v1202_v30 }
 0x56a   : > { %v886_v31 = vpop.permute.xlu1 %885  ;;  %v866_v14 = vpop.permute.xlu0 %865 }
 0x56b   : > { %889 = vst.msk [vmem:[#allocation3 + $0xc] sm:$0xf] %vm851_vm2, %v886_v31  ;;  %869 = vst.msk [vmem:[#allocation3 + $0x4] sm:$0xf] %vm851_vm2, %v866_v14  ;;  %v2011_v31 = vld [vmem:[#allocation18] ss:$0 sm:$0xff] }
 0x56d   : > { %v2400_v32 = vpop.eup %2399 }
 0x56e   : > { %v2402_v33 = vpop.eup %2401  ;;  %v1209_v34 = vmul.f32 %v2400_v32, %v2394_v19  ;;  %v980_v35 = vld [vmem:[#allocation3 + $0x8] sm:$0xf] }
 0x56f   : > { %v1312_v36 = vsel %vm1218_vm4, %v980_v35, 0  ;;  %v1208_v38 = vmul.f32 %v2402_v33, %v2392_v17  ;;  %v2012_v32 = vld [vmem:[#allocation19] ss:$0 sm:$0xff] }
 0x570   : > { %2116 = vmatpush3.bf16.msra.mxu0 %v1312_v36  ;;  %v1213_v37 = vpack.c.bf16 %v1209_v34, %v1209_v34  ;;  %v2387_v36 = vld [vmem:[#allocation24 + $0x10] sm:$0xff]  }
 0x571   : > { %2127 = vmatprep.subr.bf16.mxu0 %v2999_v0  ;;  %v1212_v42 = vpack.c.bf16 %v1208_v38, %v1208_v38  ;;  %v2404_v43 = vpop.eup %2403  ;;  %v2013_v38 = vld [vmem:[#allocation22] ss:$0 sm:$0xff] }
 0x572   : > { %v979_v39 = vld [vmem:[#allocation3 + $0x4] sm:$0xf]  ;;  %v981_v41 = vld [vmem:[#allocation3 + $0xc] sm:$0xf]  ;;  %v1210_v45 = vmul.f32 %v2404_v43, %v2396_v21 }
 0x573   : > { %2118 = vmatmul.mubr.msk.bf16.vlgmr.msra.gmra.mrb[12].mxu0 %vm982_vm3, %v1213_v37  ;;  %v1266_v40 = vsel %vm1218_vm4, %v979_v39, 0  ;;  %v1358_v44 = vsel %vm1218_vm4, %v981_v41, 0  ;;  %v2388_v37 = vld [vmem:[#allocation24 + $0x18] sm:$0xff]  }
 0x574   : > { %2110 = vmatpush3.bf16.msra.mxu1 %v1266_v40  ;;  %2131 = vmatprep.mubr.msk.bf16.mxu0 %vm3000_vm0, %v2999_v0  ;;  %v1214_v46 = vpack.c.bf16 %v1210_v45, %v1210_v45 }
 0x575   : > { %2121 = vmatprep.subr.bf16.mxu1 %v2999_v0  ;;  %2128 = vmatpush3.bf16.msra.mxu0 %v2381_v51 }
 0x576   : > { %2129 = vmatprep.subr.bf16.mxu0 %v2999_v0 }
 0x577   : > { %2112 = vmatmul.mubr.msk.bf16.vlgmr.msra.gmra.mrb[16].mxu1 %vm982_vm3, %v1212_v42 }
 0x578   : > { %2122 = vmatpush3.bf16.msra.mxu1 %v1358_v44  ;;  %2123 = vmatprep.mubr.msk.bf16.mxu1 %vm3000_vm0, %v2999_v0 }
 0x579   : > { %2135 = vmatprep.subr.bf16.mxu1 %v2999_v0  ;;  %2130 = vmatpush3.bf16.msra.mxu0 %v2382_v52 }
 0x57a   : > { %2143 = vmatprep.subr.bf16.mxu0 %v2999_v0 }
 0x57f   : > { %2124 = vmatmul.mubr.msk.bf16.vlgmr.msra.gmra.mrb[20].mxu1 %vm982_vm3, %v1214_v46  ;;  %v2017_v46 = vld [vmem:[#allocation25] ss:$0 sm:$0xff] }
 0x580   : > { %2139 = vmatprep.mubr.msk.bf16.mxu1 %vm3000_vm0, %v2999_v0  ;;  %2136 = vmatpush3.bf16.msra.mxu1 %v2383_v24 }
 0x581   : > { %2137 = vmatprep.subr.bf16.mxu1 %v2999_v0 }
 0x584   : > { %2138 = vmatpush3.bf16.msra.mxu1 %v2384_v25 }
 0x5d8   : > { %v1256_v47 = vpop.f32.mrb[8].mxu0 }
 0x5d9   : > { %v2107_v48 = vpop.f32.mrb[9].mxu0 }
 0x5da   : > { %v1259_v49 = vpop.f32.mrb[10].mxu0 }
 0x5db   : > { %v2108_v50 = vpop.f32.mrb[11].mxu0 }
 0x646   : > { %v1348_v53 = vpop.f32.mrb[12].mxu0 }
 0x647   : > { %1405 = vrot.lane.b32.xlu1 %v1348_v53, %s3008_s5  ;;  %v2119_v54 = vpop.f32.mrb[13].mxu0 }
 0x648   : > { %v1351_v55 = vpop.f32.mrb[14].mxu0 }
 0x649   : > { %v2120_v56 = vpop.f32.mrb[15].mxu0 }
 0x64a   : > { %v1302_v57 = vpop.f32.mrb[16].mxu1 }
 0x64b   : > { %1401 = vrot.lane.b32.xlu0 %v1302_v57, %s3009_s6  ;;  %v2113_v58 = vpop.f32.mrb[17].mxu1 }
 0x64c   : > { %v1305_v59 = vpop.f32.mrb[18].mxu1 }
 0x64d   : > { %v2114_v60 = vpop.f32.mrb[19].mxu1 }
 0x652   : > { %v1394_v61 = vpop.f32.mrb[20].mxu1 }
 0x653   : > { %1409 = vrot.lane.b32.xlu0 %v1394_v61, %s3010_s18  ;;  %v2125_v62 = vpop.f32.mrb[21].mxu1 }
 0x654   : > { %v1397_v63 = vpop.f32.mrb[22].mxu1 }
 0x655   : > { %v2126_v1 = vpop.f32.mrb[23].mxu1  ;;  %v2023_v63 = vld [vmem:[#allocation27] ss:$0 sm:$0xff] }
 0x6b9   : > { %v1406_v4 = vpop.permute.xlu1 %1405 }
 0x6bd   : > { %v1402_v2 = vpop.permute.xlu0 %1401 }
 0x6be   : > { %v1412_v3 = vsel %vm982_vm3, %v1256_v47, %v1402_v2  ;;  %v2024_v2 = vld [vmem:[#allocation28] ss:$0 sm:$0xff] }
 0x6bf   : > { %v1414_v5 = vsel %vm1413_vm5, %v1412_v3, %v1406_v4 }
 0x6c5   : > { %v1410_v6 = vpop.permute.xlu0 %1409 }
 0x6c6   : > { %v1416_v8 = vsel %vm1415_vm6, %v1414_v5, %v1410_v6 }
 0x6c7   : > { %v1417_v9 = vpack.c.bf16 %v1416_v8, %v1416_v8 }
 0x6c9   : > { %2132 = vmatmul.mubr.msk.bf16.vlgmr.msra.gmra.mrb[16].mxu0 %vm806_vm1, %v1417_v9 }
 0x6ca   : > { %2151 = vmatprep.mubr.msk.bf16.mxu0 %vm3000_vm0, %v2999_v0  ;;  %2144 = vmatpush3.bf16.msra.mxu0 %v2385_v26 }
 0x6cb   : > { %2145 = vmatprep.subr.bf16.mxu0 %v2999_v0 }
 0x6ce   : > { %2146 = vmatpush3.bf16.msra.mxu0 %v2386_v27 }
 0x6cf   : > { %2147 = vmatprep.subr.bf16.mxu0 %v2999_v0 }
 0x6d2   : > { %2148 = vmatpush3.bf16.msra.mxu0 %v2387_v36 }
 0x6d3   : > { %2149 = vmatprep.subr.bf16.mxu0 %v2999_v0 }
 0x6d6   : > { %2150 = vmatpush3.bf16.msra.mxu0 %v2388_v37 }
 0x79c   : > { %v1478_v11 = vpop.f32.mrb[16].mxu0 }
 0x79d   : > { %v1479_v12 = vadd.f32 %v2007_v10, %v1478_v11  ;;  %v2133_v13 = vpop.f32.mrb[17].mxu0 }
 0x79e   : > { %v1481_v15 = vpop.f32.mrb[18].mxu0 }
 0x79f   : > { %v2134_v16 = vpop.f32.mrb[19].mxu0  ;;  %v1484_v17 = vadd.f32 %v1479_v12, %v3606_v7 }
 0x7a1   : > { %v1487_v18 = vsel %vm806_vm1, %v1484_v17, 0.0 }
 0x7a2   : > { %1488 = vadd.xlane.f32.xlu1 %v1487_v18 }
 0x82f   : > { %v1489_v19 = vpop.xlane.xlu1 %1488 }
 0x830   : > { %v1491_v20 = vmul.f32 0.03125, %v1489_v19 }
 0x832   : > { %v1492_v21 = vsub.f32 %v1484_v17, %v1491_v20 }
 0x834   : > { %v1493_v22 = vmul.f32 %v1492_v21, %v1492_v21 }
 0x836   : > { %v1494_v23 = vsel %vm806_vm1, %v1493_v22, 0.0 }
 0x837   : > { %1495 = vadd.xlane.f32.xlu0 %v1494_v23 }
 0x8c4   : > { %v1496_v7 = vpop.xlane.xlu0 %1495 }
 0x8c5   : > { %v1497_v28 = vmul.f32 0.03125, %v1496_v7 }
 0x8c7   : > { %v1498_v29 = vadd.f32 1e-05, %v1497_v28 }
 0x8c9   : > { %2405 = vrsqrt.f32 %v1498_v29 }
 0x8d3   : > { %v2406_v30 = vpop.eup %2405 }
 0x8d4   : > { %v1500_v14 = vmul.f32 %v2406_v30, %v1492_v21 }
 0x8d6   : > { %v1507_v33 = vmul.f32 %v2011_v31, %v1500_v14 }
 0x8d8   : > { %v1514_v34 = vadd.f32 %v2012_v32, %v1507_v33 }
 0x8da   : > { %v1515_v35 = vpack.c.bf16 %v1514_v34, %v1514_v34 }
 0x8dc   : > { %2140 = vmatmul.mubr.msk.bf16.vlgmr.msra.gmra.mrb[24].mxu1 %vm806_vm1, %v1515_v35 }
 0x9af   : > { %v1576_v39 = vpop.f32.mrb[24].mxu1 }
 0x9b0   : > { %v1577_v40 = vadd.f32 %v2013_v38, %v1576_v39  ;;  %v2141_v41 = vpop.f32.mrb[25].mxu1 }
 0x9b1   : > { %v1579_v42 = vpop.f32.mrb[26].mxu1 }
 0x9b2   : > { %v1582_v43 = vmax.f32 %v1577_v40, 0.0  ;;  %v2142_v44 = vpop.f32.mrb[27].mxu1 }
 0x9b4   : > { %v1583_v45 = vpack.c.bf16 %v1582_v43, %v1582_v43 }
 0x9b6   : > { %2152 = vmatmul.mubr.msk.bf16.vlgmr.msra.gmra.mrb[20].mxu0 %vm1623_vm7, %v1583_v45 }
 0xa89   : > { %v1661_v47 = vpop.f32.mrb[20].mxu0 }
 0xa8a   : > { %v1662_v48 = vadd.f32 %v2017_v46, %v1661_v47  ;;  %v2153_v49 = vpop.f32.mrb[21].mxu0 }
 0xa8b   : > { %v1664_v50 = vpop.f32.mrb[22].mxu0 }
 0xa8c   : > { %v1667_v51 = vmax.f32 %v1662_v48, 0.0  ;;  %v2154_v52 = vpop.f32.mrb[23].mxu0 }
 0xa8e   : > { %v1668_v0 = vadd.f32 %v1667_v51, %v1514_v34 }
 0xa90   : > { %v1671_v53 = vsel %vm806_vm1, %v1668_v0, 0.0 }
 0xa91   : > { %1672 = vadd.xlane.f32.xlu0 %v1671_v53 }
 0xb1e   : > { %v1673_v54 = vpop.xlane.xlu0 %1672 }
 0xb1f   : > { %v1674_v55 = vmul.f32 0.03125, %v1673_v54 }
 0xb21   : > { %v1675_v56 = vsub.f32 %v1668_v0, %v1674_v55 }
 0xb23   : > { %v1676_v57 = vmul.f32 %v1675_v56, %v1675_v56 }
 0xb25   : > { %v1677_v58 = vsel %vm806_vm1, %v1676_v57, 0.0 }
 0xb26   : > { %1678 = vadd.xlane.f32.xlu1 %v1677_v58 }
 0xbb3   : > { %v1679_v59 = vpop.xlane.xlu1 %1678 }
 0xbb4   : > { %v1680_v60 = vmul.f32 0.03125, %v1679_v59 }
 0xbb6   : > { %v1681_v61 = vadd.f32 1e-05, %v1680_v60 }
 0xbb8   : > { %2407 = vrsqrt.f32 %v1681_v61 }
 0xbc2   : > { %v2408_v62 = vpop.eup %2407 }
 0xbc3   : > { %v1683_v1 = vmul.f32 %v2408_v62, %v1675_v56 }
 0xbc5   : > { %v1690_v3 = vmul.f32 %v2023_v63, %v1683_v1 }
 0xbc7   : > { %v1697_v4 = vadd.f32 %v2024_v2, %v1690_v3 }
 0xbc9   : > { %1698 = vst.msk [vmem:[%s775_s27] sm:$0xff] %vm806_vm1, %v1697_v4 }
 0xbca   : > { %2874 = shalt.err (!%p2871_p9)
}
 0xbcb   : > { %s2875_s16 = scalar_lea.hbm %s3702_s7, 128  ;;  %s2879_s18 = scalar_lea.hbm %s3849_s29, 256 }
 0xbcc   : > { %p2876_p0 = scmp.ne.s32.totalorder %s3702_s7, %s2875_s16  ;;  %p2880_p2 = scmp.lt.u32.totalorder %s3702_s7, %s3849_s29 }
 0xbcd   : > { %p2881_p10 = scmp.lt.u32.totalorder %s2879_s18, %s2875_s16  ;;  %p2883_p5 = scmp.lt.u32.totalorder %s2875_s16, %s3702_s7 }
 0xbce   : > { %p2877_p7 = pnand %p2876_p0, %p3850_p8 }
 0xbcf   : > { %p2882_p1 = por %p2881_p10, %p2880_p2 }
 0xbd0   : > { %p2878_p11 = pneg %p2877_p7 }
 0xbd1   : > { %p2884_p3 = por %p2883_p5, %p2882_p1 }
 0xbd3   : > { %p2885_p12 = pnand %p2884_p3, %p2878_p11 }
 0xbd5   : > { %2888 = shalt.err (!%p2885_p12)
}
 0xbd6   : > { %2215 = dma.vmem_to_hbm [thread:$0]  (%p3850_p8), %s3704_s8, 128, %s3702_s7, %s1700_s3  }
 0xbd7 PF: > { %s3851_s27 = sld [smem:[#allocation42_spill]]  ;;  %p3852_p6 = scmp.ne.s32.totalorder %s3822_s23, 0 }
 0xbd8   : > { %p3853_p13 = scmp.ge.s32.totalorder %s2979_s26, 2 }
 0xbda   : > { %p2268_p4 = pnand %p3853_p13, %p3852_p6 }
 0xbdd   : > { %s1726_s20 = sand.u32 1, %s3851_s27  }
 0xbde   : > { %s1727_s25 = scalar_lea.sflag [#allocation6], %s1726_s20 }
 0xbdf   : > { %2954 = dma.done.wait (!%p2268_p4), %s1727_s25, 128  }
 0xbe0   : > { %2956 = vsyncadd (!%p2268_p4), %s1727_s25, 4294967168  ;;  %s42_s26 = sadd.s32 1, %s2979_s26   ;;  %s3854_s21 = sld [smem:[#allocation43_spill]] }
 0xbe1   : > { %p39_p9 = scmp.ge.s32.totalorder %s42_s26, 4   ;;  %s3855_s22 = sld [smem:[#allocation44_spill]] }
 0xbe2   : > { %s3856_s24 = sld [smem:[#allocation46_spill]]  ;;  %s3857_s23 = smov %s3465_s30 }
 0xbe3   : > { %s3858_s25 = smov %s3860_s17  ;;  %41 = sbr.rel (!%p39_p9) target bundleno = 26 (0x1a), region = 208 }
 0xbea   :  { %1732 = vsyncpa [#allocation5], 1 }
 0xbeb   :  { %1734 = vsyncpa [#allocation5 + $0x1], 1 }
 0xbec   :  { %1735 = vsyncpa [#allocation8], 1 }
 0xbed   :  { %1737 = vsyncpa [#allocation8 + $0x1], 1 }
 0xbee   :  { %1738 = vsyncpa [#allocation11], 1 }
 0xbef   :  { %1739 = vsyncpa [#allocation14], 1 }
 0xbf0   :  { %1740 = vsyncpa [#allocation17], 1 }
 0xbf1   :  { %1741 = vsyncpa [#allocation20], 1 }
 0xbf2   :  { %1742 = vsyncpa [#allocation23], 1 }
 0xbf3   :  { %1743 = vsyncpa [#allocation26], 1 }
 0xbf4   :  { %1744 = vsyncpa [#allocation29], 1 }
 0xbf5   :  { %1745 = vsyncpa [#allocation6], 1 }
 0xbf6   :  { %1747 = vsyncpa [#allocation6 + $0x1], 1 }

</bundles_post_ra>
